<compile_context>
chip_gen: v6e
topology: v6e:2x2x1
jax: 0.10.0
libtpu: 0.0.40
codegen_flags: <defaults>
</compile_context>

<pallas_src>
import numpy as np
import jax
import jax.numpy as jnp
from jax import lax
from jax.experimental import pallas as pl
from jax.experimental.pallas import tpu as pltpu

# ----------------------------- configuration --------------------------------
DIM = 32                                    # C
NUM_HEADS = 4
ATTN_RATIO = 0.5
HEAD_DIM = DIM // NUM_HEADS                 # 8
KEY_DIM = int(HEAD_DIM * ATTN_RATIO)        # 4
SCALE = KEY_DIM ** (-0.5)
NH_KD = KEY_DIM * NUM_HEADS                 # 16
H_QKV = DIM + 2 * NH_KD                     # 64 qkv output channels (original)
BN_EPS = 1e-5

# packed / padded layout used inside the kernel
PAD_KD = 8                                  # key_dim zero-padded 4 -> 8 (sublane tile)
QK_ROWS = NUM_HEADS * PAD_KD                # 32 rows for q (and 32 for k)
V_ROWS = NUM_HEADS * HEAD_DIM               # 32 rows for v (== DIM)
QKV_PACKED_ROWS = 2 * QK_ROWS + V_ROWS      # 96

B = 2
H_IMG, W_IMG = 8, 8
N_TOK = H_IMG * W_IMG                       # 64 tokens per image
BN_TOK = B * N_TOK                          # 128 lanes: batch folded into lanes


# ------------------------------- kernel --------------------------------------
def attention_kernel(x_ref, wqkv_ref, bqkv_ref, wpe_ref, mask_ref,
                     wproj_ref, bproj_ref, o_ref):
    x = x_ref[...]                                                     # (C, B*N)

    # fused qkv 1x1 conv (+ folded BN); weights pre-packed head-blocked/padded,
    # SCALE already folded into the q rows.
    qkv = jnp.dot(wqkv_ref[...], x,
                  preferred_element_type=jnp.float32) + bqkv_ref[...]  # (96, B*N)

    # sublane-aligned, contiguous head blocks (static 32-row slices)
    q = qkv[0:QK_ROWS].reshape(NUM_HEADS, PAD_KD, BN_TOK)              # (nh, 8, B*N)
    k = qkv[QK_ROWS:2 * QK_ROWS].reshape(NUM_HEADS, PAD_KD, BN_TOK)    # (nh, 8, B*N)
    v_flat = qkv[2 * QK_ROWS:]                                         # (C,  B*N)
    v = v_flat.reshape(NUM_HEADS, HEAD_DIM, BN_TOK)                    # (nh, 8, B*N)

    # transposed attention scores: scoresT[h, key j, query i] = k_h^T @ q_h
    # (scale pre-folded into q). All heads in one batched dot_general.
    scores_t = lax.dot_general(
        k, q, dimension_numbers=(((1,), (1,)), ((0,), (0,))),
        preferred_element_type=jnp.float32)                            # (nh, B*N, B*N)

    # precomputed additive block-diagonal mask (0 same-image / -1e30 otherwise)
    scores_t = scores_t + mask_ref[...]

    # softmax over keys = sublane axis (axis=1): mostly vreg-wise VPU max/adds.
    m = jnp.max(scores_t, axis=1, keepdims=True)                       # (nh, 1, B*N)
    p = jnp.exp(scores_t - m)                                          # unnormalized
    s = jnp.sum(p, axis=1, keepdims=True)                              # (nh, 1, B*N)
    r = pl.reciprocal(s, approx=True)                                  # EUP
    r = r * (2.0 - s * r)                       # one Newton step -> full f32 accuracy

    # out_unnorm[h, d, i] = sum_j v[h, d, j] * p[h, j, i]  (p contracted on its
    # major axis -> no XLU transpose before the MXU)
    out = lax.dot_general(
        v, p, dimension_numbers=(((2,), (1,)), ((0,), (0,))),
        preferred_element_type=jnp.float32)                            # (nh, 8, B*N)
    out = out * r                               # deferred normalization: 4 vregs only
    out_flat = out.reshape(DIM, BN_TOK)                                # (C, B*N)

    # positional encoding: depthwise 3x3 conv on v via lane rolls; the 3x3
    # boundary masks are pre-folded into the per-tap weights host-side.
    pe = wpe_ref[4] * v_flat                                           # center tap
    for t in range(9):
        if t == 4:
            continue
        dy, dx = t // 3 - 1, t % 3 - 1
        shift = dy * W_IMG + dx
        shifted = pltpu.roll(v_flat, shift=(-shift) % BN_TOK, axis=1)  # XLU
        pe = pe + wpe_ref[t] * shifted

    y = out_flat + pe

    # proj 1x1 conv (+ folded BN, + folded pe bias) — lane-dense full-tile store
    o = jnp.dot(wproj_ref[...], y,
                preferred_element_type=jnp.float32) + bproj_ref[...]
    o_ref[...] = o.astype(o_ref.dtype)


def attention_forward(x_img, wqkv_packed, bqkv_packed, wpe_masked, attn_mask,
                      wproj, bproj):
    b, c, h, w = x_img.shape
    n = h * w
    bn = b * n
    # fold batch into the token/lane axis: (B, C, H, W) -> (C, B*N)
    x2d = jnp.transpose(x_img.reshape(b, c, n), (1, 0, 2)).reshape(c, bn)

    out2d = pl.pallas_call(
        attention_kernel,
        out_shape=jax.ShapeDtypeStruct((c, bn), jnp.float32),
        grid=(1,),
        in_specs=[
            pl.BlockSpec((c, bn), lambda i: (0, 0)),                  # x
            pl.BlockSpec((QKV_PACKED_ROWS, c), lambda i: (0, 0)),     # qkv weight
            pl.BlockSpec((QKV_PACKED_ROWS, 1), lambda i: (0, 0)),     # qkv bias
            pl.BlockSpec((9, c, bn), lambda i: (0, 0, 0)),            # masked pe taps
            pl.BlockSpec((bn, bn), lambda i: (0, 0)),                 # additive mask
            pl.BlockSpec((c, c), lambda i: (0, 0)),                   # proj weight
            pl.BlockSpec((c, 1), lambda i: (0, 0)),                   # proj bias (+pe)
        ],
        out_specs=pl.BlockSpec((c, bn), lambda i: (0, 0)),
        compiler_params=pltpu.CompilerParams(
            dimension_semantics=("arbitrary",)),
    )(x2d, wqkv_packed, bqkv_packed, wpe_masked, attn_mask, wproj, bproj)

    return jnp.transpose(out2d.reshape(c, b, n), (1, 0, 2)).reshape(b, c, h, w)


# --------------------------- parameter setup ---------------------------------
def fold_bn(weight, gamma, beta, mean, var):
    """Fold inference-mode BatchNorm into (scaled weight, bias)."""
    s = gamma / jnp.sqrt(var + BN_EPS)
    return weight * s[:, None], (beta - mean * s)[:, None]


def make_params(key):
    ks = jax.random.split(key, 11)
    # qkv: Conv2d(dim, h, 1) weight (h, dim); BN(h)
    w_qkv = jax.random.normal(ks[0], (H_QKV, DIM), jnp.float32) * 0.1
    g_qkv = 0.5 + jax.random.uniform(ks[1], (H_QKV,), jnp.float32)
    b_qkv = jax.random.normal(ks[2], (H_QKV,), jnp.float32) * 0.1
    m_qkv = jax.random.normal(ks[3], (H_QKV,), jnp.float32) * 0.1
    v_qkv = 0.5 + jax.random.uniform(ks[4], (H_QKV,), jnp.float32)

    # pe: Conv2d(dim, dim, 3, groups=dim) weight (dim, 1, 3, 3) -> (dim, 9); BN(dim)
    w_pe = jax.random.normal(ks[5], (DIM, 9), jnp.float32) * 0.1
    g_pe = 0.5 + jax.random.uniform(ks[6], (DIM,), jnp.float32)
    b_pe = jax.random.normal(ks[7], (DIM,), jnp.float32) * 0.1
    m_pe = jax.random.normal(ks[8], (DIM,), jnp.float32) * 0.1
    v_pe = 0.5 + jax.random.uniform(ks[9], (DIM,), jnp.float32)

    # proj: Conv2d(dim, dim, 1) weight (dim, dim); BN(dim)
    w_proj = jax.random.normal(ks[10], (DIM, DIM), jnp.float32) * 0.1
    g_proj = jnp.ones((DIM,), jnp.float32) * 0.9
    b_proj = jnp.linspace(-0.1, 0.1, DIM).astype(jnp.float32)
    m_proj = jnp.zeros((DIM,), jnp.float32)
    v_proj = jnp.ones((DIM,), jnp.float32)

    wqkv_f, bqkv_f = fold_bn(w_qkv, g_qkv, b_qkv, m_qkv, v_qkv)
    wpe_f, bpe_f = fold_bn(w_pe, g_pe, b_pe, m_pe, v_pe)
    wproj_f, bproj_f = fold_bn(w_proj, g_proj, b_proj, m_proj, v_proj)
    return wqkv_f, bqkv_f, wpe_f, bpe_f, wproj_f, bproj_f


def pack_qkv(wqkv_f, bqkv_f):
    """Re-order the head-interleaved qkv rows (q4|k4|v8 per head) into
    contiguous sublane-aligned blocks [q_pad(32) | k_pad(32) | v(32)];
    key_dim rows are zero-padded 4 -> 8 (zero rows contribute nothing).
    The attention SCALE is folded into the q rows (weight and bias)."""
    wq = np.asarray(wqkv_f)
    bq = np.asarray(bqkv_f)
    wp = np.zeros((QKV_PACKED_ROWS, DIM), np.float32)
    bp = np.zeros((QKV_PACKED_ROWS, 1), np.float32)
    d = 2 * KEY_DIM + HEAD_DIM                          # 16 channels per head
    for h in range(NUM_HEADS):
        base = h * d
        # q (pre-scaled) -> rows [8h, 8h+4)
        wp[PAD_KD * h: PAD_KD * h + KEY_DIM] = SCALE * wq[base: base + KEY_DIM]
        bp[PAD_KD * h: PAD_KD * h + KEY_DIM] = SCALE * bq[base: base + KEY_DIM]
        # k -> rows [32 + 8h, 32 + 8h + 4)
        wp[QK_ROWS + PAD_KD * h: QK_ROWS + PAD_KD * h + KEY_DIM] = \
            wq[base + KEY_DIM: base + 2 * KEY_DIM]
        bp[QK_ROWS + PAD_KD * h: QK_ROWS + PAD_KD * h + KEY_DIM] = \
            bq[base + KEY_DIM: base + 2 * KEY_DIM]
        # v -> rows [64 + 8h, 64 + 8h + 8)
        wp[2 * QK_ROWS + HEAD_DIM * h: 2 * QK_ROWS + HEAD_DIM * (h + 1)] = \
            wq[base + 2 * KEY_DIM: base + d]
        bp[2 * QK_ROWS + HEAD_DIM * h: 2 * QK_ROWS + HEAD_DIM * (h + 1)] = \
            bq[base + 2 * KEY_DIM: base + d]
    return jnp.asarray(wp), jnp.asarray(bp)


def make_masked_pe_taps(wpe_f):
    """Fold the 3x3 'SAME'-padding boundary masks into the per-tap depthwise
    weights: wpe_masked[t, c, lane] = w_pe[c, t] * valid_t[lane]."""
    wpe = np.asarray(wpe_f)                             # (C, 9)
    lane = np.arange(BN_TOK)
    ty = (lane % N_TOK) // W_IMG
    tx = lane % W_IMG
    out = np.zeros((9, DIM, BN_TOK), np.float32)
    for t in range(9):
        dy, dx = t // 3 - 1, t % 3 - 1
        valid = ((ty + dy >= 0) & (ty + dy < H_IMG) &
                 (tx + dx >= 0) & (tx + dx < W_IMG)).astype(np.float32)
        out[t] = wpe[:, t:t + 1] * valid[None, :]
    return jnp.asarray(out)


def make_attn_mask():
    """Additive block-diagonal mask over the folded batch axis: 0 for tokens
    in the same image, -1e30 across images (exp -> exact 0)."""
    lane = np.arange(BN_TOK)
    same = (lane[:, None] // N_TOK) == (lane[None, :] // N_TOK)
    return jnp.asarray(np.where(same, 0.0, -1e30).astype(np.float32))


def fold_pe_bias_into_proj(bpe_f, wproj_f, bproj_f):
    """proj is linear, so proj(y + bpe) = wproj @ y + (bproj + wproj @ bpe)."""
    return bproj_f + wproj_f @ bpe_f


# ----------------------------- pure-JAX reference ----------------------------
def reference_forward(x_img, wqkv_f, bqkv_f, wpe_f, bpe_f, wproj_f, bproj_f):
    b, c, h, w = x_img.shape
    n = h * w
    qkv = jnp.einsum('oc,bchw->bohw', wqkv_f, x_img) + bqkv_f[None, :, 0, None, None]
    d = 2 * KEY_DIM + HEAD_DIM
    qkv = qkv.reshape(b, NUM_HEADS, d, n)
    q = qkv[:, :, :KEY_DIM]
    k = qkv[:, :, KEY_DIM:2 * KEY_DIM]
    v = qkv[:, :, 2 * KEY_DIM:]
    attn = jnp.einsum('bhkn,bhkm->bhnm', q, k) * SCALE
    attn = jax.nn.softmax(attn, axis=-1)
    out = jnp.einsum('bhdj,bhij->bhdi', v, attn).reshape(b, c, h, w)
    # depthwise 3x3 conv (folded BN scale is per-channel -> commutes into weight)
    v_img = v.reshape(b, c, h, w)
    pe = lax.conv_general_dilated(
        v_img, wpe_f.reshape(c, 1, 3, 3), window_strides=(1, 1),
        padding='SAME', feature_group_count=c,
        dimension_numbers=('NCHW', 'OIHW', 'NCHW'))
    pe = pe + bpe_f[None, :, 0, None, None]
    y = out + pe
    return jnp.einsum('oc,bchw->bohw', wproj_f, y) + bproj_f[None, :, 0, None, None]


# ---------------------------------- main --------------------------------------
if __name__ == "__main__":
    key = jax.random.PRNGKey(0)
    kx, kp = jax.random.split(key)
    x_img = jax.random.normal(kx, (B, DIM, H_IMG, W_IMG), jnp.float32)

    wqkv_f, bqkv_f, wpe_f, bpe_f, wproj_f, bproj_f = make_params(kp)

    # host-side packing / folding (one-time, free at run time)
    wqkv_p, bqkv_p = pack_qkv(wqkv_f, bqkv_f)
    wpe_masked = make_masked_pe_taps(wpe_f)
    attn_mask = make_attn_mask()
    bproj_full = fold_pe_bias_into_proj(bpe_f, wproj_f, bproj_f)

    out = attention_forward(x_img, wqkv_p, bqkv_p, wpe_masked, attn_mask,
                            wproj_f, bproj_full)
    out = jax.block_until_ready(out)

    ref = jax.block_until_ready(
        reference_forward(x_img, wqkv_f, bqkv_f, wpe_f, bpe_f, wproj_f, bproj_f))

    # tolerance has a little headroom for the EUP approx-reciprocal path
    if not np.allclose(np.asarray(out), np.asarray(ref), atol=1e-3, rtol=1e-3):
        err = np.max(np.abs(np.asarray(out) - np.asarray(ref)))
        raise AssertionError(f"Pallas kernel output mismatch vs JAX reference (max |err|={err})")
    print("KERNEL_OK")
</pallas_src>

<mosaic_0001>
module attributes {stable_mosaic.version = 11 : i64} {
  func.func @attention_kernel(%arg0: i32, %arg1: memref<32x128xf32, #tpu.memory_space<vmem>>, %arg2: memref<96x32xf32, #tpu.memory_space<vmem>>, %arg3: memref<96x1xf32, #tpu.memory_space<vmem>>, %arg4: memref<9x32x128xf32, #tpu.memory_space<vmem>>, %arg5: memref<128x128xf32, #tpu.memory_space<vmem>>, %arg6: memref<32x32xf32, #tpu.memory_space<vmem>>, %arg7: memref<32x1xf32, #tpu.memory_space<vmem>>, %arg8: memref<32x128xf32, #tpu.memory_space<vmem>>) attributes {dimension_semantics = [#tpu.dimension_semantics<arbitrary>], iteration_bounds = array<i64: 1>, scalar_prefetch = 0 : i64, scratch_operands = 0 : i64, tpu.core_type = #tpu.core_type<tc>, window_params = [{pipeline_mode = #tpu.pipeline_mode<synchronous>, transform_indices = @transform_0, window_bounds = array<i64: 32, 128>}, {pipeline_mode = #tpu.pipeline_mode<synchronous>, transform_indices = @transform_1, window_bounds = array<i64: 96, 32>}, {pipeline_mode = #tpu.pipeline_mode<synchronous>, transform_indices = @transform_2, window_bounds = array<i64: 96, 1>}, {pipeline_mode = #tpu.pipeline_mode<synchronous>, transform_indices = @transform_3, window_bounds = array<i64: 9, 32, 128>}, {pipeline_mode = #tpu.pipeline_mode<synchronous>, transform_indices = @transform_4, window_bounds = array<i64: 128, 128>}, {pipeline_mode = #tpu.pipeline_mode<synchronous>, transform_indices = @transform_5, window_bounds = array<i64: 32, 32>}, {pipeline_mode = #tpu.pipeline_mode<synchronous>, transform_indices = @transform_6, window_bounds = array<i64: 32, 1>}, {pipeline_mode = #tpu.pipeline_mode<synchronous>, transform_indices = @transform_7, window_bounds = array<i64: 32, 128>}]} {
    %c0 = arith.constant 0 : index
    %c0_0 = arith.constant 0 : index
    %0 = vector.load %arg1[%c0, %c0_0] : memref<32x128xf32, #tpu.memory_space<vmem>>, vector<32x128xf32>
    %c0_1 = arith.constant 0 : index
    %c0_2 = arith.constant 0 : index
    %1 = vector.load %arg2[%c0_1, %c0_2] : memref<96x32xf32, #tpu.memory_space<vmem>>, vector<96x32xf32>
    %cst = arith.constant dense<0.000000e+00> : vector<96x128xf32>
    %2 = tpu.matmul %1, %0, %cst {dimension_numbers = #tpu.dot_dimension_numbers<[1], [0], [0], [1], [0, 0, 1, 1], [], []>} : vector<96x32xf32>, vector<32x128xf32>, vector<96x128xf32> -> vector<96x128xf32>
    %c0_3 = arith.constant 0 : index
    %c0_4 = arith.constant 0 : index
    %3 = vector.load %arg3[%c0_3, %c0_4] : memref<96x1xf32, #tpu.memory_space<vmem>>, vector<96x1xf32>
    %4 = vector.broadcast %3 : vector<96x1xf32> to vector<96x128xf32>
    %5 = arith.addf %2, %4 : vector<96x128xf32>
    %6 = vector.extract_strided_slice %5 {offsets = [0, 0], sizes = [32, 128], strides = [1, 1]} : vector<96x128xf32> to vector<32x128xf32>
    %7 = vector.shape_cast %6 : vector<32x128xf32> to vector<4x8x128xf32>
    %8 = vector.extract_strided_slice %5 {offsets = [32, 0], sizes = [32, 128], strides = [1, 1]} : vector<96x128xf32> to vector<32x128xf32>
    %9 = vector.shape_cast %8 : vector<32x128xf32> to vector<4x8x128xf32>
    %10 = vector.extract_strided_slice %5 {offsets = [64, 0], sizes = [32, 128], strides = [1, 1]} : vector<96x128xf32> to vector<32x128xf32>
    %11 = vector.shape_cast %10 : vector<32x128xf32> to vector<4x8x128xf32>
    %cst_5 = arith.constant dense<0.000000e+00> : vector<4x128x128xf32>
    %12 = tpu.matmul %9, %7, %cst_5 {dimension_numbers = #tpu.dot_dimension_numbers<[1], [1], [2], [2], [0, 0, 0, 2, 1, 2], [0], [0]>} : vector<4x8x128xf32>, vector<4x8x128xf32>, vector<4x128x128xf32> -> vector<4x128x128xf32>
    %c0_6 = arith.constant 0 : index
    %c0_7 = arith.constant 0 : index
    %13 = vector.load %arg5[%c0_6, %c0_7] : memref<128x128xf32, #tpu.memory_space<vmem>>, vector<128x128xf32>
    %14 = vector.shape_cast %13 : vector<128x128xf32> to vector<1x128x128xf32>
    %15 = vector.broadcast %14 : vector<1x128x128xf32> to vector<4x128x128xf32>
    %16 = arith.addf %12, %15 : vector<4x128x128xf32>
    %cst_8 = arith.constant dense<0xFF800000> : vector<4x128xf32>
    %17 = vector.multi_reduction <maximumf>, %16, %cst_8 [1] : vector<4x128x128xf32> to vector<4x128xf32>
    %18 = vector.shape_cast %17 : vector<4x128xf32> to vector<4x1x128xf32>
    %19 = vector.broadcast %18 : vector<4x1x128xf32> to vector<4x128x128xf32>
    %20 = arith.subf %16, %19 : vector<4x128x128xf32>
    %21 = math.exp %20 : vector<4x128x128xf32>
    %cst_9 = arith.constant dense<0.000000e+00> : vector<4x128xf32>
    %22 = vector.multi_reduction <add>, %21, %cst_9 [1] : vector<4x128x128xf32> to vector<4x128xf32>
    %23 = vector.shape_cast %22 : vector<4x128xf32> to vector<4x1x128xf32>
    %24 = tpu.reciprocal %23 {approx = true} : vector<4x1x128xf32> -> vector<4x1x128xf32>
    %25 = arith.mulf %23, %24 : vector<4x1x128xf32>
    %cst_10 = arith.constant 2.000000e+00 : f32
    %26 = vector.broadcast %cst_10 : f32 to vector<4x1x128xf32>
    %27 = arith.subf %26, %25 : vector<4x1x128xf32>
    %28 = arith.mulf %24, %27 : vector<4x1x128xf32>
    %cst_11 = arith.constant dense<0.000000e+00> : vector<4x8x128xf32>
    %29 = tpu.matmul %11, %21, %cst_11 {dimension_numbers = #tpu.dot_dimension_numbers<[2], [1], [1], [2], [0, 0, 0, 1, 1, 2], [0], [0]>} : vector<4x8x128xf32>, vector<4x128x128xf32>, vector<4x8x128xf32> -> vector<4x8x128xf32>
    %30 = vector.broadcast %28 : vector<4x1x128xf32> to vector<4x8x128xf32>
    %31 = arith.mulf %29, %30 : vector<4x8x128xf32>
    %32 = vector.shape_cast %31 : vector<4x8x128xf32> to vector<32x128xf32>
    %c4 = arith.constant 4 : index
    %c0_12 = arith.constant 0 : index
    %c0_13 = arith.constant 0 : index
    %33 = vector.load %arg4[%c4, %c0_12, %c0_13] : memref<9x32x128xf32, #tpu.memory_space<vmem>>, vector<1x32x128xf32>
    %34 = vector.shape_cast %33 : vector<1x32x128xf32> to vector<32x128xf32>
    %35 = arith.mulf %34, %10 : vector<32x128xf32>
    %c9_i32 = arith.constant 9 : i32
    %36 = tpu.dynamic_rotate %10 by %c9_i32 dim 1 : vector<32x128xf32>, i32 -> vector<32x128xf32>
    %c0_14 = arith.constant 0 : index
    %c0_15 = arith.constant 0 : index
    %c0_16 = arith.constant 0 : index
    %37 = vector.load %arg4[%c0_14, %c0_15, %c0_16] : memref<9x32x128xf32, #tpu.memory_space<vmem>>, vector<1x32x128xf32>
    %38 = vector.shape_cast %37 : vector<1x32x128xf32> to vector<32x128xf32>
    %39 = arith.mulf %38, %36 : vector<32x128xf32>
    %40 = arith.addf %35, %39 : vector<32x128xf32>
    %c8_i32 = arith.constant 8 : i32
    %41 = tpu.dynamic_rotate %10 by %c8_i32 dim 1 : vector<32x128xf32>, i32 -> vector<32x128xf32>
    %c1 = arith.constant 1 : index
    %c0_17 = arith.constant 0 : index
    %c0_18 = arith.constant 0 : index
    %42 = vector.load %arg4[%c1, %c0_17, %c0_18] : memref<9x32x128xf32, #tpu.memory_space<vmem>>, vector<1x32x128xf32>
    %43 = vector.shape_cast %42 : vector<1x32x128xf32> to vector<32x128xf32>
    %44 = arith.mulf %43, %41 : vector<32x128xf32>
    %45 = arith.addf %40, %44 : vector<32x128xf32>
    %c7_i32 = arith.constant 7 : i32
    %46 = tpu.dynamic_rotate %10 by %c7_i32 dim 1 : vector<32x128xf32>, i32 -> vector<32x128xf32>
    %c2 = arith.constant 2 : index
    %c0_19 = arith.constant 0 : index
    %c0_20 = arith.constant 0 : index
    %47 = vector.load %arg4[%c2, %c0_19, %c0_20] : memref<9x32x128xf32, #tpu.memory_space<vmem>>, vector<1x32x128xf32>
    %48 = vector.shape_cast %47 : vector<1x32x128xf32> to vector<32x128xf32>
    %49 = arith.mulf %48, %46 : vector<32x128xf32>
    %50 = arith.addf %45, %49 : vector<32x128xf32>
    %c1_i32 = arith.constant 1 : i32
    %51 = tpu.dynamic_rotate %10 by %c1_i32 dim 1 : vector<32x128xf32>, i32 -> vector<32x128xf32>
    %c3 = arith.constant 3 : index
    %c0_21 = arith.constant 0 : index
    %c0_22 = arith.constant 0 : index
    %52 = vector.load %arg4[%c3, %c0_21, %c0_22] : memref<9x32x128xf32, #tpu.memory_space<vmem>>, vector<1x32x128xf32>
    %53 = vector.shape_cast %52 : vector<1x32x128xf32> to vector<32x128xf32>
    %54 = arith.mulf %53, %51 : vector<32x128xf32>
    %55 = arith.addf %50, %54 : vector<32x128xf32>
    %c127_i32 = arith.constant 127 : i32
    %56 = tpu.dynamic_rotate %10 by %c127_i32 dim 1 : vector<32x128xf32>, i32 -> vector<32x128xf32>
    %c5 = arith.constant 5 : index
    %c0_23 = arith.constant 0 : index
    %c0_24 = arith.constant 0 : index
    %57 = vector.load %arg4[%c5, %c0_23, %c0_24] : memref<9x32x128xf32, #tpu.memory_space<vmem>>, vector<1x32x128xf32>
    %58 = vector.shape_cast %57 : vector<1x32x128xf32> to vector<32x128xf32>
    %59 = arith.mulf %58, %56 : vector<32x128xf32>
    %60 = arith.addf %55, %59 : vector<32x128xf32>
    %c121_i32 = arith.constant 121 : i32
    %61 = tpu.dynamic_rotate %10 by %c121_i32 dim 1 : vector<32x128xf32>, i32 -> vector<32x128xf32>
    %c6 = arith.constant 6 : index
    %c0_25 = arith.constant 0 : index
    %c0_26 = arith.constant 0 : index
    %62 = vector.load %arg4[%c6, %c0_25, %c0_26] : memref<9x32x128xf32, #tpu.memory_space<vmem>>, vector<1x32x128xf32>
    %63 = vector.shape_cast %62 : vector<1x32x128xf32> to vector<32x128xf32>
    %64 = arith.mulf %63, %61 : vector<32x128xf32>
    %65 = arith.addf %60, %64 : vector<32x128xf32>
    %c120_i32 = arith.constant 120 : i32
    %66 = tpu.dynamic_rotate %10 by %c120_i32 dim 1 : vector<32x128xf32>, i32 -> vector<32x128xf32>
    %c7 = arith.constant 7 : index
    %c0_27 = arith.constant 0 : index
    %c0_28 = arith.constant 0 : index
    %67 = vector.load %arg4[%c7, %c0_27, %c0_28] : memref<9x32x128xf32, #tpu.memory_space<vmem>>, vector<1x32x128xf32>
    %68 = vector.shape_cast %67 : vector<1x32x128xf32> to vector<32x128xf32>
    %69 = arith.mulf %68, %66 : vector<32x128xf32>
    %70 = arith.addf %65, %69 : vector<32x128xf32>
    %c119_i32 = arith.constant 119 : i32
    %71 = tpu.dynamic_rotate %10 by %c119_i32 dim 1 : vector<32x128xf32>, i32 -> vector<32x128xf32>
    %c8 = arith.constant 8 : index
    %c0_29 = arith.constant 0 : index
    %c0_30 = arith.constant 0 : index
    %72 = vector.load %arg4[%c8, %c0_29, %c0_30] : memref<9x32x128xf32, #tpu.memory_space<vmem>>, vector<1x32x128xf32>
    %73 = vector.shape_cast %72 : vector<1x32x128xf32> to vector<32x128xf32>
    %74 = arith.mulf %73, %71 : vector<32x128xf32>
    %75 = arith.addf %70, %74 : vector<32x128xf32>
    %76 = arith.addf %32, %75 : vector<32x128xf32>
    %c0_31 = arith.constant 0 : index
    %c0_32 = arith.constant 0 : index
    %77 = vector.load %arg6[%c0_31, %c0_32] : memref<32x32xf32, #tpu.memory_space<vmem>>, vector<32x32xf32>
    %cst_33 = arith.constant dense<0.000000e+00> : vector<32x128xf32>
    %78 = tpu.matmul %77, %76, %cst_33 {dimension_numbers = #tpu.dot_dimension_numbers<[1], [0], [0], [1], [0, 0, 1, 1], [], []>} : vector<32x32xf32>, vector<32x128xf32>, vector<32x128xf32> -> vector<32x128xf32>
    %c0_34 = arith.constant 0 : index
    %c0_35 = arith.constant 0 : index
    %79 = vector.load %arg7[%c0_34, %c0_35] : memref<32x1xf32, #tpu.memory_space<vmem>>, vector<32x1xf32>
    %80 = vector.broadcast %79 : vector<32x1xf32> to vector<32x128xf32>
    %81 = arith.addf %78, %80 : vector<32x128xf32>
    %c0_36 = arith.constant 0 : index
    %c0_37 = arith.constant 0 : index
    %82 = vector.load %arg8[%c0_36, %c0_37] : memref<32x128xf32, #tpu.memory_space<vmem>>, vector<32x128xf32>
    tpu.vector_store %arg8[%c0_36, %c0_37], %81 {strides = array<i32>} : memref<32x128xf32, #tpu.memory_space<vmem>>, vector<32x128xf32>,
    return
  }
  func.func @transform_0(%arg0: i32) -> (i32, i32) {
    %c0_i32 = arith.constant 0 : i32
    %c0_i32_0 = arith.constant 0 : i32
    %c0_i32_1 = arith.constant 0 : i32
    return %c0_i32, %c0_i32_0 : i32, i32
  }
  func.func @transform_1(%arg0: i32) -> (i32, i32) {
    %c0_i32 = arith.constant 0 : i32
    %c0_i32_0 = arith.constant 0 : i32
    %c0_i32_1 = arith.constant 0 : i32
    return %c0_i32, %c0_i32_0 : i32, i32
  }
  func.func @transform_2(%arg0: i32) -> (i32, i32) {
    %c0_i32 = arith.constant 0 : i32
    %c0_i32_0 = arith.constant 0 : i32
    %c0_i32_1 = arith.constant 0 : i32
    return %c0_i32, %c0_i32_0 : i32, i32
  }
  func.func @transform_3(%arg0: i32) -> (i32, i32, i32) {
    %c0_i32 = arith.constant 0 : i32
    %c0_i32_0 = arith.constant 0 : i32
    %c0_i32_1 = arith.constant 0 : i32
    %c0_i32_2 = arith.constant 0 : i32
    return %c0_i32, %c0_i32_0, %c0_i32_1 : i32, i32, i32
  }
  func.func @transform_4(%arg0: i32) -> (i32, i32) {
    %c0_i32 = arith.constant 0 : i32
    %c0_i32_0 = arith.constant 0 : i32
    %c0_i32_1 = arith.constant 0 : i32
    return %c0_i32, %c0_i32_0 : i32, i32
  }
  func.func @transform_5(%arg0: i32) -> (i32, i32) {
    %c0_i32 = arith.constant 0 : i32
    %c0_i32_0 = arith.constant 0 : i32
    %c0_i32_1 = arith.constant 0 : i32
    return %c0_i32, %c0_i32_0 : i32, i32
  }
  func.func @transform_6(%arg0: i32) -> (i32, i32) {
    %c0_i32 = arith.constant 0 : i32
    %c0_i32_0 = arith.constant 0 : i32
    %c0_i32_1 = arith.constant 0 : i32
    return %c0_i32, %c0_i32_0 : i32, i32
  }
  func.func @transform_7(%arg0: i32) -> (i32, i32) {
    %c0_i32 = arith.constant 0 : i32
    %c0_i32_0 = arith.constant 0 : i32
    %c0_i32_1 = arith.constant 0 : i32
    return %c0_i32, %c0_i32_0 : i32, i32
  }
}

</mosaic_0001>

<bundles_post_ra>
// kernel: tpu_custom_call.1
= control target key start
LH: loop header
LB: loop body
LE: loop exit
PB: predicated region body
PF: predicated region fallthrough
CT: control target
= control target key end

     0   :  { %12 = vsyncpa [#allocation3], 0  ;;  %s3949_s0 = inlined_call_operand.vmem [shape: f32[32,128], index: 0, kind: input, shape index: {}]   ;;  %s3950_s1 = inlined_call_operand.vmem [shape: f32[96,32], index: 1, kind: input, shape index: {}]   ;;  %s3951_s2 = inlined_call_operand.vmem [shape: f32[96,1], index: 2, kind: input, shape index: {}]   ;;  %s3952_s3 = inlined_call_operand.hbm [shape: f32[9,32,128], index: 3, kind: input, shape index: {}]   ;;  %s3953_s4 = inlined_call_operand.vmem [shape: f32[128,128], index: 4, kind: input, shape index: {}]   ;;  %s3954_s5 = inlined_call_operand.vmem [shape: f32[32,32], index: 5, kind: input, shape index: {}]   ;;  %s3955_s6 = inlined_call_operand.vmem [shape: f32[32,1], index: 6, kind: input, shape index: {}]   ;;  %s3956_s7 = inlined_call_operand.hbm [shape: f32[32,128], index: 7, kind: output, shape index: {}]  }
   0x1   :  { %13 = vsyncpa [#allocation4], 0  ;;  %s2921_s24 = smov [#allocation2]  }
   0x2   :  { %s25_s25 = sshll.u32 %s2921_s24, 4  ;;  %s26_s25 = int_to_ptr.vmem [resolvable:$true] %s25_s25 }
   0x3   :  { %s2885_s26 = scalar_lea.vmem %s26_s25, 4608  ;;  %p2890_p1 = scmp.lt.s32.totalorder %s26_s25, %s26_s25 }
   0x4   :  { %p2886_p0 = scmp.ne.s32.totalorder %s26_s25, %s2885_s26  ;;  %p2891_p2 = scmp.lt.s32.totalorder %s2885_s26, %s2885_s26 }
   0x6   :  { %p2892_p3 = por %p2891_p2, %p2890_p1 }
   0x8   :  { %p2893_p4 = pnand %p2892_p3, %p2886_p0 }
   0xa   :  { %2896 = shalt.err (!%p2893_p4)
}
   0xb   :  { %s2922_s27 = smov 128   ;;  %s2923_s28 = smov 8  }
   0xc   :  { %31 = dma.hbm_to_vmem [thread:$0]  %s3952_s3, 4608, %s26_s25, [#allocation3], %s2922_s27, %s2922_s27, %s2923_s28  }
   0xd   :  { %2917 = dma.done.wait [#allocation3], 4608  }
   0xe   :  { %2918 = vsyncadd [#allocation3], 4294962688  ;;  %v2924_v0 = vmov 0   ;;  %vm129_vm0 = vcmask 261120   ;;  %v44_v1 = vld [vmem:[%s3949_s0 + $0x18] sm:$0xff]  ;;  %v43_v2 = vld [vmem:[%s3949_s0 + $0x10] sm:$0xff] }
   0xf   :  { %2735 = vset.pattern.permute.xlu1 %v2924_v0  ;;  %2734 = vset.pattern.permute.xlu0 %v2924_v0  ;;  %v45_v3 = vld [vmem:[%s3950_s1] sm:$0xff]  ;;  %v42_v4 = vld [vmem:[%s3949_s0 + $0x8] sm:$0xff]  ;;  %v64_v10 = vld [vmem:[%s3951_s2 + $0x38] sm:$0xff]  ;;  %vm339_vm1 = vcmask 64512   ;;  %s2926_s16 = smov 7   ;;  %s2927_s17 = smov 120  }
  0x10   :  { %2434 = vmatprep.subr.mxu0 %v44_v1  ;;  %2442 = vmatprep.mubr.msk.f32.mxu0 %vm129_vm0, %v45_v3  ;;  %v61_v5 = vld [vmem:[%s3951_s2 + $0x20] sm:$0xff]  ;;  %v62_v8 = vld [vmem:[%s3951_s2 + $0x28] sm:$0xff]  ;;  %v47_v11 = vld [vmem:[%s3950_s1 + $0x10] sm:$0xff]  ;;  %s2928_s18 = smov 1   ;;  %s2929_s19 = smov 119   ;;  %vm2933_vm2 = vmmov 0  }
  0x11   :  { %2435 = vmatpush3.msra.mxu0 %v44_v1  ;;  %v57_v6 = vld [vmem:[%s3951_s2] sm:$0xff]  ;;  %91 = vperm.xlu0 %2734, %v61_v5   ;;  %v46_v9 = vld [vmem:[%s3950_s1 + $0x8] sm:$0xff]  ;;  %v48_v13 = vld [vmem:[%s3950_s1 + $0x18] sm:$0xff]  ;;  %s2930_s22 = smov 127   ;;  %s2931_s25 = smov 121  }
  0x12   :  { %2436 = vmatprep.subr.mxu0 %v43_v2  ;;  %v41_v7 = vld [vmem:[%s3949_s0] sm:$0xff]  ;;  %71 = vperm.xlu1 %2735, %v57_v6   ;;  %v58_v12 = vld [vmem:[%s3951_s2 + $0x8] sm:$0xff]  ;;  %v63_v14 = vld [vmem:[%s3951_s2 + $0x30] sm:$0xff]  ;;  %s2934_s29 = smov [#allocation5]  }
  0x13   :  { %2437 = vmatpush3.msra.mxu0 %v43_v2  ;;  %v49_v15 = vld [vmem:[%s3950_s1 + $0x20] sm:$0xff]  ;;  %v50_v16 = vld [vmem:[%s3950_s1 + $0x28] sm:$0xff]  ;;  %v60_v17 = vld [vmem:[%s3951_s2 + $0x18] sm:$0xff]  ;;  %s2182_s30 = sshll.u32 %s2934_s29, 4  ;;  %s2183_s30 = int_to_ptr.vmem [resolvable:$true] %s2182_s30 }
  0x14   :  { %2438 = vmatprep.subr.mxu0 %v42_v4  ;;  %v51_v18 = vld [vmem:[%s3950_s1 + $0x30] sm:$0xff]  ;;  %v52_v19 = vld [vmem:[%s3950_s1 + $0x38] sm:$0xff]  ;;  %v53_v20 = vld [vmem:[%s3950_s1 + $0x40] sm:$0xff]  ;;  %p2902_p6 = scmp.lt.s32.totalorder %s2183_s30, %s2183_s30 }
  0x15   :  { %2439 = vmatpush3.msra.mxu0 %v42_v4  ;;  %96 = vperm.xlu0 %2734, %v62_v8   ;;  %v54_v21 = vld [vmem:[%s3950_s1 + $0x48] sm:$0xff]  ;;  %v55_v22 = vld [vmem:[%s3950_s1 + $0x50] sm:$0xff]  ;;  %v56_v23 = vld [vmem:[%s3950_s1 + $0x58] sm:$0xff] }
  0x16   :  { %2440 = vmatprep.subr.mxu0 %v41_v7  ;;  %106 = vperm.xlu1 %2735, %v64_v10   ;;  %v59_v44 = vld [vmem:[%s3951_s2 + $0x10] sm:$0xff]  ;;  %v66_v45 = vld [vmem:[%s3951_s2 + $0x48] sm:$0xff]  ;;  %v65_v46 = vld [vmem:[%s3951_s2 + $0x40] sm:$0xff] }
  0x17   :  { %2441 = vmatpush3.msra.mxu0 %v41_v7  ;;  %v68_v47 = vld [vmem:[%s3951_s2 + $0x58] sm:$0xff]  ;;  %v67_v48 = vld [vmem:[%s3951_s2 + $0x50] sm:$0xff]  ;;  %s2925_s2 = smov 9  }
  0x18   :  { %2443 = vmatmul.mubr.msk.f32.vlgmr.msra.gmra.mxu0 %vm129_vm0, %v46_v9 }
  0x19   :  { %2445 = vmatprep.mubr.msk.f32.mxu0 %vm129_vm0, %v47_v11  ;;  %76 = vperm.xlu0 %2734, %v58_v12  }
  0x1a   :  { %101 = vperm.xlu1 %2735, %v63_v14  }
  0x1c   :  { %2446 = vmatmul.mubr.msk.f32.gmra.mxu0 %vm129_vm0, %v48_v13 }
  0x1d   :  { %2448 = vmatprep.mubr.msk.f32.mxu0 %vm129_vm0, %v49_v15 }
  0x1e   :  { %86 = vperm.xlu1 %2735, %v60_v17  }
  0x20   :  { %2449 = vmatmul.mubr.msk.f32.gmra.mxu0 %vm129_vm0, %v50_v16 }
  0x21   :  { %2451 = vmatprep.mubr.msk.f32.mxu0 %vm129_vm0, %v51_v18 }
  0x24   :  { %2452 = vmatmul.mubr.msk.f32.gmra.mxu0 %vm129_vm0, %v52_v19 }
  0x25   :  { %2454 = vmatprep.mubr.msk.f32.mxu0 %vm129_vm0, %v53_v20 }
  0x28   :  { %2455 = vmatmul.mubr.msk.f32.gmra.mxu0 %vm129_vm0, %v54_v21 }
  0x29   :  { %2457 = vmatprep.mubr.msk.f32.mxu0 %vm129_vm0, %v55_v22 }
  0x2c   :  { %2458 = vmatmul.mubr.msk.f32.gmra.mxu0 %vm129_vm0, %v56_v23 }
  0x8c   :  { %v92_v25 = vpop.permute.xlu0 %91 }
  0x8d   :  { %v72_v24 = vpop.permute.xlu1 %71 }
  0x90   :  { %v97_v27 = vpop.permute.xlu0 %96 }
  0x91   :  { %v107_v26 = vpop.permute.xlu1 %106 }
  0x94   :  { %v77_v29 = vpop.permute.xlu0 %76 }
  0x95   :  { %v102_v28 = vpop.permute.xlu1 %101 }
  0x99   :  { %v87_v33 = vpop.permute.xlu1 %86 }
  0xd8   :  { %v2444_v30 = vpop.f32.mrf.mxu0 }
  0xd9   :  { %v238_v31 = vadd.f32 %v2444_v30, %v77_v29 }
  0xda   :  { %v232_v32 = vpop.f32.mrf.mxu0 }
  0xdb   :  { %v233_v34 = vadd.f32 %v232_v32, %v72_v24  ;;  %2486 = vmatprep.subr.mxu0 %v238_v31 }
  0xdc   :  { %v2447_v35 = vpop.f32.mrf.mxu0  ;;  %2487 = vmatpush3.msra.mxu0 %v238_v31 }
  0xdd   :  { %v248_v36 = vadd.f32 %v2447_v35, %v87_v33  ;;  %2460 = vmatprep.subr.mxu1 %v233_v34 }
  0xde   :  { %v3062_v37 = vpop.f32.mrf.mxu0  ;;  %2461 = vmatpush3.msra.mxu1 %v233_v34 }
  0xdf   :  { %2718 = vmatprep.subr.mxu1 %v238_v31  ;;  %2538 = vmatprep.subr.mxu0 %v248_v36 }
  0xe0   :  { %v2450_v38 = vpop.f32.mrf.mxu0 }
  0xe1   :  { %v258_v39 = vadd.f32 %v2450_v38, %v97_v27 }
  0xe2   :  { %v252_v40 = vpop.f32.mrf.mxu0 }
  0xe3   :  { %v253_v41 = vadd.f32 %v252_v40, %v92_v25  ;;  %533 = vxpose.xlu1.b32.start.end [1/1] (short) %v258_v39, 128 }
  0xe4   :  { %v2453_v42 = vpop.f32.mrf.mxu0 }
  0xe5   :  { %307 = vxpose.xlu0.b32.start.end [1/1] (short) %v253_v41, 128  ;;  %v268_v43 = vadd.f32 %v2453_v42, %v107_v26  ;;  %v2053_v42 = vld [vmem:[%s3955_s6 + $0x8] sm:$0xff] }
  0xe6   :  { %v262_v49 = vpop.f32.mrf.mxu0 }
  0xe7   :  { %v263_v50 = vadd.f32 %v262_v49, %v102_v28 }
  0xe8   :  { %v2456_v32 = vpop.f32.mrf.mxu0 }
 0x120   :  { %983 = vxpose.xlu1.b32.start.end [1/1] (short) %v268_v43, 128 }
 0x14a   :  { %81 = vperm.xlu0 %2734, %v59_v44   ;;  %v2055_v44 = vld [vmem:[%s3955_s6 + $0x18] sm:$0xff] }
 0x14e   :  { %116 = vperm.xlu0 %2734, %v66_v45  }
 0x152   :  { %111 = vperm.xlu0 %2734, %v65_v46  }
 0x156   :  { %126 = vperm.xlu0 %2734, %v68_v47  }
 0x15a   :  { %121 = vperm.xlu0 %2734, %v67_v48  }
 0x15d   :  { %758 = vxpose.xlu1.b32.start.end [1/1] (short) %v263_v50, 128 }
 0x15f   :  { %v549_v51 = vpop.trf.xlu1 }
 0x160   :  { %2488 = vmatprep.mubr.msk.f32.mxu0 %vm339_vm1, %v549_v51 }
 0x161   :  { %v323_v52 = vpop.trf.xlu0 }
 0x162   :  { %2462 = vmatprep.mubr.msk.f32.mxu1 %vm339_vm1, %v323_v52 }
 0x163   :  { %v550_v53 = vpop.trf.xlu1 }
 0x164   :  { %2489 = vmatmul.mubr.msk.f32.vlgmr.msra.gmra.mxu0 %vm339_vm1, %v550_v53 }
 0x165   :  { %2539 = vmatpush3.msra.mxu0 %v248_v36  ;;  %v324_v54 = vpop.trf.xlu0  ;;  %v272_v36 = vpop.f32.mrf.mxu0 }
 0x166   :  { %2463 = vmatmul.mubr.msk.f32.vlgmr.msra.gmra.mxu1 %vm339_vm1, %v324_v54 }
 0x167   :  { %2719 = vmatpush3.msra.mxu1 %v238_v31  ;;  %v551_v55 = vpop.trf.xlu1  ;;  %v2459_v47 = vpop.f32.mrf.mxu0 }
 0x168   :  { %2491 = vmatprep.mubr.msk.f32.mxu0 %vm339_vm1, %v551_v55 }
 0x169   :  { %v325_v56 = vpop.trf.xlu0 }
 0x16a   :  { %2465 = vmatprep.mubr.msk.f32.mxu1 %vm339_vm1, %v325_v56  ;;  %v282_v56 = vpop.f32.mrf.mxu0 }
 0x16b   :  { %v552_v57 = vpop.trf.xlu1 }
 0x16c   :  { %2492 = vmatmul.mubr.msk.f32.gmra.mxu0 %vm339_vm1, %v552_v57 }
 0x16d   :  { %v326_v58 = vpop.trf.xlu0 }
 0x16e   :  { %2466 = vmatmul.mubr.msk.f32.gmra.mxu1 %vm339_vm1, %v326_v58 }
 0x16f   :  { %v553_v59 = vpop.trf.xlu1 }
 0x170   :  { %2494 = vmatprep.mubr.msk.f32.mxu0 %vm339_vm1, %v553_v59 }
 0x171   :  { %v327_v60 = vpop.trf.xlu0 }
 0x172   :  { %2468 = vmatprep.mubr.msk.f32.mxu1 %vm339_vm1, %v327_v60 }
 0x173   :  { %v554_v61 = vpop.trf.xlu1 }
 0x174   :  { %2495 = vmatmul.mubr.msk.f32.gmra.mxu0 %vm339_vm1, %v554_v61  ;;  %v3957_v61 = vmov 0.0  }
 0x175   :  { %v328_v62 = vpop.trf.xlu0  ;;  %2599 = vmatprep.subr.mxu0 %v3957_v61 }
 0x176   :  { %2469 = vmatmul.mubr.msk.f32.gmra.mxu1 %vm339_vm1, %v328_v62 }
 0x177   :  { %v555_v63 = vpop.trf.xlu1 }
 0x178   :  { %2497 = vmatprep.mubr.msk.f32.mxu0 %vm339_vm1, %v555_v63 }
 0x179   :  { %v329_v0 = vpop.trf.xlu0 }
 0x17a   :  { %2471 = vmatprep.mubr.msk.f32.mxu1 %vm339_vm1, %v329_v0 }
 0x17b   :  { %v556_v1 = vpop.trf.xlu1 }
 0x17c   :  { %2498 = vmatmul.mubr.msk.f32.gmra.mxu0 %vm339_vm1, %v556_v1 }
 0x17d   :  { %v330_v2 = vpop.trf.xlu0 }
 0x17e   :  { %2472 = vmatmul.mubr.msk.f32.gmra.mxu1 %vm339_vm1, %v330_v2 }
 0x17f   :  { %v557_v3 = vpop.trf.xlu1 }
 0x180   :  { %2500 = vmatprep.mubr.msk.f32.mxu0 %vm339_vm1, %v557_v3 }
 0x181   :  { %v331_v4 = vpop.trf.xlu0 }
 0x182   :  { %2474 = vmatprep.mubr.msk.f32.mxu1 %vm339_vm1, %v331_v4 }
 0x183   :  { %v558_v5 = vpop.trf.xlu1 }
 0x184   :  { %2501 = vmatmul.mubr.msk.f32.gmra.mxu0 %vm339_vm1, %v558_v5 }
 0x185   :  { %v332_v6 = vpop.trf.xlu0 }
 0x186   :  { %2475 = vmatmul.mubr.msk.f32.gmra.mxu1 %vm339_vm1, %v332_v6  ;;  %v3217_v6 = vld [vmem:[%s3953_s4 + $0x8] sm:$0xff] }
 0x187   :  { %v559_v7 = vpop.trf.xlu1  ;;  %3980 = vst [vmem:[#allocation12_spill] sm:$0xff] %v3217_v6 }
 0x188   :  { %2503 = vmatprep.mubr.msk.f32.mxu0 %vm339_vm1, %v559_v7  ;;  %v3222_v7 = vld [vmem:[%s3953_s4] sm:$0xff] }
 0x189   :  { %v333_v8 = vpop.trf.xlu0  ;;  %3981 = vst [vmem:[#allocation13_spill] sm:$0xff] %v3222_v7 }
 0x18a   :  { %2477 = vmatprep.mubr.msk.f32.mxu1 %vm339_vm1, %v333_v8 }
 0x18b   :  { %v560_v9 = vpop.trf.xlu1 }
 0x18c   :  { %2504 = vmatmul.mubr.msk.f32.gmra.mxu0 %vm339_vm1, %v560_v9 }
 0x18d   :  { %v334_v10 = vpop.trf.xlu0 }
 0x18e   :  { %2478 = vmatmul.mubr.msk.f32.gmra.mxu1 %vm339_vm1, %v334_v10 }
 0x18f   :  { %v561_v11 = vpop.trf.xlu1 }
 0x191   :  { %v335_v12 = vpop.trf.xlu0 }
 0x192   :  { %2480 = vmatprep.mubr.msk.f32.mxu1 %vm339_vm1, %v335_v12 }
 0x193   :  { %v562_v13 = vpop.trf.xlu1 }
 0x195   :  { %v336_v14 = vpop.trf.xlu0 }
 0x196   :  { %2481 = vmatmul.mubr.msk.f32.gmra.mxu1 %vm339_vm1, %v336_v14 }
 0x197   :  { %v563_v15 = vpop.trf.xlu1 }
 0x199   :  { %v337_v16 = vpop.trf.xlu0 }
 0x19a   :  { %2483 = vmatprep.mubr.msk.f32.mxu1 %vm339_vm1, %v337_v16 }
 0x19b   :  { %v564_v17 = vpop.trf.xlu1 }
 0x19d   :  { %v338_v18 = vpop.trf.xlu0 }
 0x19e   :  { %2484 = vmatmul.mubr.msk.f32.gmra.mxu1 %vm339_vm1, %v338_v18 }
 0x19f   :  { %v999_v19 = vpop.trf.xlu1  ;;  %2506 = vmatprep.mubr.msk.f32.mxu1 %vm339_vm1, %v561_v11  ;;  %v3235_v11 = vld [vmem:[%s3953_s4 + $0x10] sm:$0xff] }
 0x1a0   :  { %2540 = vmatprep.mubr.msk.f32.mxu0 %vm339_vm1, %v999_v19 }
 0x1a2   :  { %2507 = vmatmul.mubr.msk.f32.vlgmr.msra.gmra.mxu1 %vm339_vm1, %v562_v13 }
 0x1a3   :  { %v1000_v20 = vpop.trf.xlu1  ;;  %2509 = vmatprep.mubr.msk.f32.mxu1 %vm339_vm1, %v563_v15  ;;  %v3247_v15 = vld [vmem:[%s3953_s4 + $0x18] sm:$0xff] }
 0x1a4   :  { %2541 = vmatmul.mubr.msk.f32.vlgmr.msra.gmra.mxu0 %vm339_vm1, %v1000_v20  ;;  %v3262_v20 = vld [vmem:[%s3953_s4 + $0x20] sm:$0xff] }
 0x1a6   :  { %2510 = vmatmul.mubr.msk.f32.gmra.mxu1 %vm339_vm1, %v564_v17 }
 0x1a7   :  { %v1001_v21 = vpop.trf.xlu1 }
 0x1a8   :  { %2543 = vmatprep.mubr.msk.f32.mxu0 %vm339_vm1, %v1001_v21 }
 0x1ab   :  { %v1002_v22 = vpop.trf.xlu1 }
 0x1ac   :  { %2544 = vmatmul.mubr.msk.f32.gmra.mxu0 %vm339_vm1, %v1002_v22 }
 0x1af   :  { %v1003_v23 = vpop.trf.xlu1 }
 0x1b0   :  { %2546 = vmatprep.mubr.msk.f32.mxu0 %vm339_vm1, %v1003_v23 }
 0x1b3   :  { %v1004_v24 = vpop.trf.xlu1 }
 0x1b4   :  { %2547 = vmatmul.mubr.msk.f32.gmra.mxu0 %vm339_vm1, %v1004_v24 }
 0x1b7   :  { %v1005_v25 = vpop.trf.xlu1 }
 0x1b8   :  { %2549 = vmatprep.mubr.msk.f32.mxu0 %vm339_vm1, %v1005_v25  ;;  %v3273_v25 = vld [vmem:[%s3953_s4 + $0x28] sm:$0xff] }
 0x1bb   :  { %v1006_v26 = vpop.trf.xlu1 }
 0x1bc   :  { %2550 = vmatmul.mubr.msk.f32.gmra.mxu0 %vm339_vm1, %v1006_v26  ;;  %v1886_v26 = vld [vmem:[#allocation2 + $0x8] sm:$0xff] }
 0x1bf   :  { %v1007_v27 = vpop.trf.xlu1 }
 0x1c0   :  { %2552 = vmatprep.mubr.msk.f32.mxu0 %vm339_vm1, %v1007_v27 }
 0x1c3   :  { %v1008_v28 = vpop.trf.xlu1 }
 0x1c4   :  { %2553 = vmatmul.mubr.msk.f32.gmra.mxu0 %vm339_vm1, %v1008_v28 }
 0x1c5   :  { %v82_v29 = vpop.permute.xlu0 %81 }
 0x1c6   :  { %v243_v30 = vadd.f32 %v3062_v37, %v82_v29 }
 0x1c7   :  { %v1009_v31 = vpop.trf.xlu1 }
 0x1c8   :  { %2512 = vmatprep.subr.mxu1 %v243_v30  ;;  %2555 = vmatprep.mubr.msk.f32.mxu0 %vm339_vm1, %v1009_v31  ;;  %v1870_v31 = vld [vmem:[#allocation2 + $0x88] sm:$0xff] }
 0x1c9   :  { %v117_v33 = vpop.permute.xlu0 %116  ;;  %2513 = vmatpush3.msra.mxu1 %v243_v30  ;;  %v2052_v30 = vld [vmem:[%s3955_s6] sm:$0xff] }
 0x1ca   :  { %v3123_v34 = vadd.f32 %v2456_v32, %v117_v33  ;;  %2564 = vmatprep.subr.mxu1 %v3957_v61 }
 0x1cb   :  { %v1010_v35 = vpop.trf.xlu1 }
 0x1cc   :  { %3976 = vst [vmem:[#allocation8_spill] sm:$0xff] %v3123_v34  ;;  %2556 = vmatmul.mubr.msk.f32.gmra.mxu0 %vm339_vm1, %v1010_v35  ;;  %1879 = vrot.lane.b32.xlu0 %v3123_v34, %s2925_s2 }
 0x1cd   :  { %v112_v38 = vpop.permute.xlu0 %111 }
 0x1ce   :  { %v3128_v39 = vadd.f32 %v272_v36, %v112_v38  ;;  %v1907_v36 = vld [vmem:[#allocation2 + $0x28] sm:$0xff] }
 0x1cf   :  { %v1011_v37 = vpop.trf.xlu1 }
 0x1d0   :  { %3977 = vst [vmem:[#allocation9_spill] sm:$0xff] %v3128_v39  ;;  %2558 = vmatprep.mubr.msk.f32.mxu0 %vm339_vm1, %v1011_v37  ;;  %1899 = vrot.lane.b32.xlu0 %v3123_v34, %s2923_s28 }
 0x1d1   :  { %1877 = vrot.lane.b32.xlu1 %v3128_v39, %s2925_s2  ;;  %v127_v48 = vpop.permute.xlu0 %126 }
 0x1d2   :  { %v3163_v50 = vadd.f32 %v2459_v47, %v127_v48  ;;  %v3303_v48 = vld [vmem:[%s3953_s4 + $0x38] sm:$0xff] }
 0x1d3   :  { %v1012_v40 = vpop.trf.xlu1 }
 0x1d4   :  { %2559 = vmatmul.mubr.msk.f32.gmra.mxu0 %vm339_vm1, %v1012_v40  ;;  %1920 = vrot.lane.b32.xlu0 %v3123_v34, %s2926_s16  ;;  %3978 = vst [vmem:[#allocation10_spill] sm:$0xff] %v3163_v50  ;;  %v3288_v40 = vld [vmem:[%s3953_s4 + $0x30] sm:$0xff] }
 0x1d5   :  { %2002 = vrot.lane.b32.xlu1 %v3128_v39, %s2927_s17  ;;  %v122_v57 = vpop.permute.xlu0 %121 }
 0x1d6   :  { %v3183_v59 = vadd.f32 %v282_v56, %v122_v57 }
 0x1d7   :  { %v1013_v41 = vpop.trf.xlu1 }
 0x1d8   :  { %2561 = vmatprep.mubr.msk.f32.mxu0 %vm339_vm1, %v1013_v41  ;;  %1941 = vrot.lane.b32.xlu0 %v3123_v34, %s2928_s18  ;;  %3979 = vst [vmem:[#allocation11_spill] sm:$0xff] %v3183_v59  ;;  %v1874_v41 = vmul.f32 %v1870_v31, %v3123_v34 }
 0x1d9   :  { %2023 = vrot.lane.b32.xlu1 %v3128_v39, %s2929_s19 }
 0x1db   :  { %v1014_v43 = vpop.trf.xlu1 }
 0x1dc   :  { %2562 = vmatmul.mubr.msk.f32.gmra.mxu0 %vm339_vm1, %v1014_v43  ;;  %1962 = vrot.lane.b32.xlu0 %v3123_v34, %s2930_s22 }
 0x1dd   :  { %2063 = vperm.xlu1 %2735, %v2053_v42   ;;  %2631 = vmatprep.mubr.msk.f32.mxu0 %vm2933_vm2, %v3957_v61  ;;  %v2054_v42 = vld [vmem:[%s3955_s6 + $0x10] sm:$0xff] }
 0x1df   :  { %v774_v45 = vpop.trf.xlu1 }
 0x1e0   :  { %1897 = vrot.lane.b32.xlu0 %v3128_v39, %s2923_s28  ;;  %2514 = vmatprep.mubr.msk.f32.mxu1 %vm339_vm1, %v774_v45 }
 0x1e1   :  { %2073 = vperm.xlu1 %2735, %v2055_v44  }
 0x1e3   :  { %v775_v46 = vpop.trf.xlu1 }
 0x1e4   :  { %1918 = vrot.lane.b32.xlu0 %v3128_v39, %s2926_s16  ;;  %2515 = vmatmul.mubr.msk.f32.vlgmr.msra.gmra.mxu1 %vm339_vm1, %v775_v46 }
 0x1e7   :  { %v776_v49 = vpop.trf.xlu1 }
 0x1e8   :  { %1939 = vrot.lane.b32.xlu0 %v3128_v39, %s2928_s18  ;;  %2517 = vmatprep.mubr.msk.f32.mxu1 %vm339_vm1, %v776_v49 }
 0x1eb   :  { %v777_v51 = vpop.trf.xlu1 }
 0x1ec   :  { %1883 = vrot.lane.b32.xlu0 %v3163_v50, %s2925_s2  ;;  %2518 = vmatmul.mubr.msk.f32.gmra.mxu1 %vm339_vm1, %v777_v51 }
 0x1ef   :  { %v778_v52 = vpop.trf.xlu1 }
 0x1f0   :  { %1903 = vrot.lane.b32.xlu0 %v3163_v50, %s2923_s28  ;;  %2520 = vmatprep.mubr.msk.f32.mxu1 %vm339_vm1, %v778_v52  ;;  %v1928_v52 = vld [vmem:[#allocation2 + $0x48] sm:$0xff] }
 0x1f3   :  { %v779_v53 = vpop.trf.xlu1 }
 0x1f4   :  { %1924 = vrot.lane.b32.xlu0 %v3163_v50, %s2926_s16  ;;  %2521 = vmatmul.mubr.msk.f32.gmra.mxu1 %vm339_vm1, %v779_v53 }
 0x1f7   :  { %v780_v54 = vpop.trf.xlu1 }
 0x1f8   :  { %1945 = vrot.lane.b32.xlu0 %v3163_v50, %s2928_s18  ;;  %2523 = vmatprep.mubr.msk.f32.mxu1 %vm339_vm1, %v780_v54 }
 0x1fb   :  { %v781_v55 = vpop.trf.xlu1 }
 0x1fc   :  { %1966 = vrot.lane.b32.xlu0 %v3163_v50, %s2930_s22  ;;  %2524 = vmatmul.mubr.msk.f32.gmra.mxu1 %vm339_vm1, %v781_v55 }
 0x1ff   :  { %v782_v58 = vpop.trf.xlu1 }
 0x200   :  { %1987 = vrot.lane.b32.xlu0 %v3163_v50, %s2931_s25  ;;  %2526 = vmatprep.mubr.msk.f32.mxu1 %vm339_vm1, %v782_v58 }
 0x203   :  { %v783_v60 = vpop.trf.xlu1 }
 0x204   :  { %1881 = vrot.lane.b32.xlu0 %v3183_v59, %s2925_s2  ;;  %2527 = vmatmul.mubr.msk.f32.gmra.mxu1 %vm339_vm1, %v783_v60 }
 0x207   :  { %v784_v62 = vpop.trf.xlu1 }
 0x208   :  { %1901 = vrot.lane.b32.xlu0 %v3183_v59, %s2923_s28  ;;  %2529 = vmatprep.mubr.msk.f32.mxu1 %vm339_vm1, %v784_v62 }
 0x20b   :  { %v785_v63 = vpop.trf.xlu1 }
 0x20c   :  { %1922 = vrot.lane.b32.xlu0 %v3183_v59, %s2926_s16  ;;  %2530 = vmatmul.mubr.msk.f32.gmra.mxu1 %vm339_vm1, %v785_v63 }
 0x20f   :  { %v786_v0 = vpop.trf.xlu1 }
 0x210   :  { %1943 = vrot.lane.b32.xlu0 %v3183_v59, %s2928_s18  ;;  %2532 = vmatprep.mubr.msk.f32.mxu1 %vm339_vm1, %v786_v0 }
 0x213   :  { %v787_v1 = vpop.trf.xlu1 }
 0x214   :  { %1964 = vrot.lane.b32.xlu0 %v3183_v59, %s2930_s22  ;;  %2533 = vmatmul.mubr.msk.f32.gmra.mxu1 %vm339_vm1, %v787_v1  ;;  %v1949_v1 = vld [vmem:[#allocation2 + $0x68] sm:$0xff] }
 0x217   :  { %v788_v2 = vpop.trf.xlu1 }
 0x218   :  { %1985 = vrot.lane.b32.xlu0 %v3183_v59, %s2931_s25  ;;  %2535 = vmatprep.mubr.msk.f32.mxu1 %vm339_vm1, %v788_v2 }
 0x21b   :  { %v789_v3 = vpop.trf.xlu1 }
 0x21c   :  { %2008 = vrot.lane.b32.xlu0 %v3163_v50, %s2927_s17  ;;  %2536 = vmatmul.mubr.msk.f32.gmra.mxu1 %vm339_vm1, %v789_v3 }
 0x21d   :  { %2596 = vmatprep.mubr.msk.f32.mxu1 %vm2933_vm2, %v3957_v61 }
 0x220   :  { %1960 = vrot.lane.b32.xlu0 %v3128_v39, %s2930_s22 }
 0x224   :  { %1983 = vrot.lane.b32.xlu0 %v3123_v34, %s2931_s25  ;;  %v2490_v19 = vpop.f32.mrf.mxu0 }
 0x225   :  { %v3310_v55 = vadd.f32 %v2490_v19, %v3217_v6 }
 0x226   :  { %v2464_v4 = vpop.f32.mrf.mxu1  ;;  %v679_v24 = vpop.f32.mrf.mxu0 }
 0x227   :  { %v3227_v8 = vadd.f32 %v2464_v4, %v3217_v6  ;;  %v3298_v46 = vadd.f32 %v679_v24, %v3222_v7  ;;  %v1970_v24 = vld [vmem:[#allocation2 + $0xa8] sm:$0xff] }
 0x228   :  { %2006 = vrot.lane.b32.xlu0 %v3183_v59, %s2927_s17  ;;  %v454_v5 = vpop.f32.mrf.mxu1 }
 0x229   :  { %v3230_v9 = vadd.f32 %v454_v5, %v3222_v7  ;;  %v1229_v60 = vmax.f32 %v3298_v46, %v3310_v55  ;;  %v3322_v5 = vld [vmem:[%s3953_s4 + $0x40] sm:$0xff] }
 0x22b   :  { %v1208_v12 = vmax.f32 %v3230_v9, %v3227_v8 }
 0x22c   :  { %2029 = vrot.lane.b32.xlu0 %v3163_v50, %s2929_s19  ;;  %v2493_v29 = vpop.f32.mrf.mxu0 }
 0x22e   :  { %v2467_v10 = vpop.f32.mrf.mxu1  ;;  %v689_v37 = vpop.f32.mrf.mxu0 }
 0x22f   :  { %v3252_v16 = vadd.f32 %v2467_v10, %v3247_v15  ;;  %v3313_v56 = vadd.f32 %v689_v37, %v3235_v11 }
 0x230   :  { %1981 = vrot.lane.b32.xlu0 %v3128_v39, %s2931_s25  ;;  %v464_v13 = vpop.f32.mrf.mxu1 }
 0x231   :  { %v3242_v14 = vadd.f32 %v464_v13, %v3235_v11  ;;  %v1230_v3 = vmax.f32 %v1229_v60, %v3313_v56  ;;  %v3361_v60 = vld [vmem:[%s3953_s4 + $0x58] sm:$0xff] }
 0x232   :  { %3983 = vst [vmem:[#allocation15_spill] sm:$0xff] %v3361_v60 }
 0x233   :  { %v1209_v17 = vmax.f32 %v1208_v12, %v3242_v14 }
 0x234   :  { %2004 = vrot.lane.b32.xlu0 %v3123_v34, %s2927_s17  ;;  %v2496_v47 = vpop.f32.mrf.mxu0 }
 0x235   :  { %v1210_v22 = vmax.f32 %v1209_v17, %v3252_v16 }
 0x236   :  { %v2470_v18 = vpop.f32.mrf.mxu1  ;;  %v699_v62 = vpop.f32.mrf.mxu0 }
 0x237   :  { %v3278_v27 = vadd.f32 %v2470_v18, %v3273_v25  ;;  %v3328_v18 = vadd.f32 %v2493_v29, %v3247_v15  ;;  %v3331_v19 = vadd.f32 %v699_v62, %v3262_v20 }
 0x238   :  { %2027 = vrot.lane.b32.xlu0 %v3183_v59, %s2929_s19  ;;  %v474_v21 = vpop.f32.mrf.mxu1 }
 0x239   :  { %v3268_v23 = vadd.f32 %v474_v21, %v3262_v20  ;;  %v3336_v21 = vld [vmem:[%s3953_s4 + $0x48] sm:$0xff] }
 0x23b   :  { %v1211_v28 = vmax.f32 %v1210_v22, %v3268_v23 }
 0x23c   :  { %2025 = vrot.lane.b32.xlu0 %v3123_v34, %s2929_s19  ;;  %v2499_v4 = vpop.f32.mrf.mxu0 }
 0x23d   :  { %v1212_v38 = vmax.f32 %v1211_v28, %v3278_v27 }
 0x23e   :  { %v1880_v32 = vpop.permute.xlu0 %1879  ;;  %v2473_v35 = vpop.f32.mrf.mxu1 }
 0x23f   :  { %v1890_v33 = vmul.f32 %v1886_v26, %v1880_v32  ;;  %v3306_v53 = vadd.f32 %v2473_v35, %v3303_v48  ;;  %v709_v31 = vpop.f32.mrf.mxu0  ;;  %v1885_v32 = vld [vmem:[#allocation2] sm:$0xff] }
 0x240   :  { %2058 = vperm.xlu0 %2734, %v2052_v30   ;;  %v484_v43 = vpop.f32.mrf.mxu1  ;;  %v1231_v30 = vmax.f32 %v1230_v3, %v3328_v18 }
 0x241   :  { %v3295_v45 = vadd.f32 %v484_v43, %v3288_v40  ;;  %v1894_v49 = vadd.f32 %v1890_v33, %v1874_v41  ;;  %v1906_v43 = vld [vmem:[#allocation2 + $0x20] sm:$0xff] }
 0x242   :  { %v1900_v44 = vpop.permute.xlu0 %1899 }
 0x243   :  { %v1911_v51 = vmul.f32 %v1907_v36, %v1900_v44  ;;  %v1213_v54 = vmax.f32 %v1212_v38, %v3295_v45  ;;  %v1878_v33 = vpop.permute.xlu1 %1877  ;;  %v1232_v36 = vmax.f32 %v1231_v30, %v3331_v19 }
 0x244   :  { %2068 = vperm.xlu0 %2734, %v2054_v42   ;;  %v2502_v38 = vpop.f32.mrf.mxu0  ;;  %v1869_v42 = vld [vmem:[#allocation2 + $0x80] sm:$0xff] }
 0x245   :  { %v1915_v57 = vadd.f32 %v1911_v51, %v1894_v49  ;;  %v1214_v2 = vmax.f32 %v1213_v54, %v3306_v53  ;;  %v3346_v49 = vadd.f32 %v2496_v47, %v3273_v25  ;;  %v3349_v51 = vadd.f32 %v709_v31, %v3288_v40  ;;  %v3354_v54 = vld [vmem:[%s3953_s4 + $0x50] sm:$0xff] }
 0x246   :  { %v1921_v58 = vpop.permute.xlu0 %1920  ;;  %v2476_v0 = vpop.f32.mrf.mxu1 }
 0x247   :  { %v1932_v63 = vmul.f32 %v1928_v52, %v1921_v58  ;;  %v3339_v26 = vadd.f32 %v2476_v0, %v3336_v21  ;;  %v1889_v52 = vmul.f32 %v1885_v32, %v1878_v33  ;;  %v1873_v0 = vmul.f32 %v1869_v42, %v3128_v39 }
 0x248   :  { %v494_v12 = vpop.f32.mrf.mxu1 }
 0x249   :  { %v1936_v10 = vadd.f32 %v1932_v63, %v1915_v57  ;;  %v3325_v17 = vadd.f32 %v494_v12, %v3322_v5  ;;  %v1233_v63 = vmax.f32 %v1232_v36, %v3346_v49 }
 0x24a   :  { %v1942_v13 = vpop.permute.xlu0 %1941 }
 0x24b   :  { %v1953_v22 = vmul.f32 %v1949_v1, %v1942_v13  ;;  %v1215_v28 = vmax.f32 %v1214_v2, %v3325_v17  ;;  %v719_v1 = vpop.f32.mrf.mxu0  ;;  %v1234_v13 = vmax.f32 %v1233_v63, %v3349_v51 }
 0x24c   :  { %v3382_v32 = vadd.f32 %v719_v1, %v3322_v5 }
 0x24d   :  { %v1957_v29 = vadd.f32 %v1953_v22, %v1936_v10  ;;  %v1216_v44 = vmax.f32 %v1215_v28, %v3339_v26  ;;  %v1927_v10 = vld [vmem:[#allocation2 + $0x40] sm:$0xff]  ;;  %v1893_v22 = vadd.f32 %v1889_v52, %v1873_v0  ;;  %v3374_v28 = vadd.f32 %v2499_v4, %v3303_v48  ;;  %v3388_v4 = vld [vmem:[%s3953_s4 + $0x68] sm:$0xff] }
 0x24e   :  { %v1963_v35 = vpop.permute.xlu0 %1962  ;;  %v2479_v41 = vpop.f32.mrf.mxu1  ;;  %3985 = vst [vmem:[#allocation17_spill] sm:$0xff] %v3388_v4 }
 0x24f   :  { %v1974_v37 = vmul.f32 %v1970_v24, %v1963_v35  ;;  %v3369_v3 = vadd.f32 %v2479_v41, %v3361_v60  ;;  %v2505_v24 = vpop.f32.mrf.mxu0  ;;  %v1235_v42 = vmax.f32 %v1234_v13, %v3374_v28 }
 0x250   :  { %v504_v58 = vpop.f32.mrf.mxu1 }
 0x251   :  { %v3356_v57 = vadd.f32 %v1974_v37, %v1957_v29  ;;  %v3364_v47 = vadd.f32 %v504_v58, %v3354_v54  ;;  %v3379_v29 = vld [vmem:[%s3953_s4 + $0x60] sm:$0xff]  ;;  %v729_v52 = vpop.f32.mrf.mxu0 }
 0x252   :  { %v1898_v62 = vpop.permute.xlu0 %1897  ;;  %3984 = vst [vmem:[#allocation16_spill] sm:$0xff] %v3379_v29  ;;  %v1948_v37 = vld [vmem:[#allocation2 + $0x60] sm:$0xff] }
 0x253   :  { %3982 = vst [vmem:[#allocation14_spill] sm:$0xff] %v3356_v57  ;;  %v1910_v2 = vmul.f32 %v1906_v43, %v1898_v62  ;;  %v1217_v12 = vmax.f32 %v1216_v44, %v3364_v47  ;;  %v1236_v62 = vmax.f32 %v1235_v42, %v3382_v32 }
 0x255   :  { %v1914_v33 = vadd.f32 %v1910_v2, %v1893_v22  ;;  %v1218_v36 = vmax.f32 %v1217_v12, %v3369_v3  ;;  %v3400_v2 = vadd.f32 %v2502_v38, %v3336_v21  ;;  %v3412_v22 = vld [vmem:[%s3953_s4 + $0x78] sm:$0xff] }
 0x256   :  { %v1919_v30 = vpop.permute.xlu0 %1918  ;;  %v2482_v31 = vpop.f32.mrf.mxu1  ;;  %3988 = vst [vmem:[#allocation20_spill] sm:$0xff] %v3412_v22 }
 0x257   :  { %v1931_v35 = vmul.f32 %v1927_v10, %v1919_v30  ;;  %v3396_v0 = vadd.f32 %v2482_v31, %v3388_v4  ;;  %v3403_v10 = vadd.f32 %v729_v52, %v3354_v54  ;;  %v3417_v31 = vld [vmem:[%s3953_s4 + $0x70] sm:$0xff]  ;;  %v1237_v38 = vmax.f32 %v1236_v62, %v3400_v2 }
 0x258   :  { %v514_v41 = vpop.f32.mrf.mxu1  ;;  %3989 = vst [vmem:[#allocation21_spill] sm:$0xff] %v3417_v31  ;;  %v3427_v52 = vadd.f32 %v2505_v24, %v3361_v60 }
 0x259   :  { %v1935_v43 = vadd.f32 %v1931_v35, %v1914_v33  ;;  %v3392_v44 = vadd.f32 %v514_v41, %v3379_v29 }
 0x25a   :  { %v1940_v58 = vpop.permute.xlu0 %1939 }
 0x25b   :  { %v1952_v63 = vmul.f32 %v1948_v37, %v1940_v58  ;;  %v1219_v1 = vmax.f32 %v1218_v36, %v3392_v44  ;;  %v1238_v36 = vmax.f32 %v1237_v38, %v3403_v10 }
 0x25d   :  { %v3405_v12 = vadd.f32 %v1952_v63, %v1935_v43  ;;  %v1220_v33 = vmax.f32 %v1219_v1, %v3396_v0  ;;  %v1239_v1 = vmax.f32 %v1238_v36, %v3427_v52 }
 0x25e   :  { %v3407_v13 = vpop.permute.xlu0 %1883  ;;  %v2485_v30 = vpop.f32.mrf.mxu1 }
 0x25f   :  { %3986 = vst [vmem:[#allocation18_spill] sm:$0xff] %v3405_v12  ;;  %3987 = vst [vmem:[#allocation19_spill] sm:$0xff] %v3407_v13  ;;  %v530_v37 = vadd.f32 %v2485_v30, %v3412_v22 }
 0x260   :  { %v524_v35 = vpop.f32.mrf.mxu1 }
 0x261   :  { %v525_v41 = vadd.f32 %v524_v35, %v3417_v31 }
 0x262   :  { %v3424_v42 = vpop.permute.xlu0 %1903  ;;  %v2508_v43 = vpop.f32.mrf.mxu1 }
 0x263   :  { %3990 = vst [vmem:[#allocation22_spill] sm:$0xff] %v3424_v42  ;;  %v1221_v58 = vmax.f32 %v1220_v33, %v525_v41  ;;  %v3436_v30 = vadd.f32 %v2508_v43, %v3388_v4 }
 0x264   :  { %v739_v63 = vpop.f32.mrf.mxu1  ;;  %v2542_v50 = vpop.f32.mrf.mxu0 }
 0x265   :  { %v1222_v61 = vmax.f32 %v1221_v58, %v530_v37  ;;  %v3430_v62 = vadd.f32 %v739_v63, %v3379_v29 }
 0x266   :  { %v3433_v13 = vpop.permute.xlu0 %1924  ;;  %v2511_v42 = vpop.f32.mrf.mxu1 }
 0x267   :  { %3991 = vst [vmem:[#allocation23_spill] sm:$0xff] %v3433_v13  ;;  %v1223_v38 = vrot.slane %v1222_v61, 4  ;;  %v1240_v35 = vmax.f32 %v1239_v1, %v3430_v62  ;;  %v1129_v39 = vpop.f32.mrf.mxu0  ;;  %v3446_v13 = vadd.f32 %v2511_v42, %v3412_v22 }
 0x268   :  { %v749_v34 = vpop.f32.mrf.mxu1 }
 0x269   :  { %v1224_v24 = vmax.f32 %v1222_v61, %v1223_v38  ;;  %v1241_v33 = vmax.f32 %v1240_v35, %v3436_v30  ;;  %v3441_v58 = vadd.f32 %v749_v34, %v3417_v31  ;;  %v3455_v34 = vadd.f32 %v1129_v39, %v3222_v7 }
 0x26a   :  { %v3443_v63 = vpop.permute.xlu0 %1945 }
 0x26b   :  { %3992 = vst [vmem:[#allocation24_spill] sm:$0xff] %v3443_v63  ;;  %v1225_v36 = vrot.slane %v1224_v24, 2  ;;  %v1242_v43 = vmax.f32 %v1241_v33, %v3441_v58  ;;  %3994 = vst [vmem:[#allocation26_spill] sm:$0xff] %v3455_v34  ;;  %v3462_v33 = vadd.f32 %v2542_v50, %v3217_v6 }
 0x26c   :  { %v2545_v57 = vpop.f32.mrf.mxu0 }
 0x26d   :  { %v1226_v4 = vmax.f32 %v1224_v24, %v1225_v36  ;;  %v1243_v1 = vmax.f32 %v1242_v43, %v3446_v13  ;;  %v1271_v50 = vmax.f32 %v3455_v34, %v3462_v33 }
 0x26e   :  { %v3450_v61 = vpop.permute.xlu0 %1966  ;;  %v1139_v31 = vpop.f32.mrf.mxu0 }
 0x26f   :  { %3993 = vst [vmem:[#allocation25_spill] sm:$0xff] %v3450_v61  ;;  %v1227_v38 = vrot.slane %v1226_v4, 1  ;;  %v1244_v35 = vrot.slane %v1243_v1, 4  ;;  %v1887_v61 = vld [vmem:[#allocation2 + $0x10] sm:$0xff] }
 0x271   :  { %v3452_v29 = vmax.f32 %v1226_v4, %v1227_v38  ;;  %v1245_v63 = vmax.f32 %v1243_v1, %v1244_v35  ;;  %v3469_v38 = vadd.f32 %v1139_v31, %v3235_v11 }
 0x272   :  { %v3457_v60 = vpop.permute.xlu0 %1987 }
 0x273   :  { %3995 = vst [vmem:[#allocation27_spill] sm:$0xff] %v3457_v60  ;;  %v1306_v42 = vsub.f32 %v525_v41, %v3452_v29  ;;  %v1307_v24 = vsub.f32 %v530_v37, %v3452_v29  ;;  %v1246_v36 = vrot.slane %v1245_v63, 2  ;;  %v1305_v4 = vsub.f32 %v3396_v0, %v3452_v29  ;;  %v1871_v60 = vld [vmem:[#allocation2 + $0x90] sm:$0xff] }
 0x274   :  { %v2548_v43 = vpop.f32.mrf.mxu0  ;;  %v1304_v39 = vsub.f32 %v3392_v44, %v3452_v29  ;;  %v1303_v37 = vsub.f32 %v3369_v3, %v3452_v29  ;;  %v1302_v44 = vsub.f32 %v3364_v47, %v3452_v29  ;;  %v1301_v3 = vsub.f32 %v3339_v26, %v3452_v29 }
 0x275   :  { %v1384_v1 = vmul.f32 1.442695, %v1306_v42  ;;  %v1386_v35 = vmul.f32 1.442695, %v1307_v24  ;;  %v1247_v41 = vmax.f32 %v1245_v63, %v1246_v36  ;;  %v1382_v7 = vmul.f32 1.442695, %v1305_v4 }
 0x276   :  { %v1882_v6 = vpop.permute.xlu0 %1881  ;;  %v1149_v0 = vpop.f32.mrf.mxu0  ;;  %v1380_v12 = vmul.f32 1.442695, %v1304_v39  ;;  %v1908_v42 = vld [vmem:[#allocation2 + $0x30] sm:$0xff]  ;;  %v1300_v24 = vsub.f32 %v3325_v17, %v3452_v29  ;;  %v3482_v63 = vadd.f32 %v2545_v57, %v3247_v15  ;;  %v1272_v36 = vmax.f32 %v1271_v50, %v3469_v38 }
 0x277   :  { %2736 = vpow2.f32 %v1384_v1  ;;  %v1891_v22 = vmul.f32 %v1887_v61, %v1882_v6  ;;  %v1248_v31 = vrot.slane %v1247_v41, 1  ;;  %v1875_v6 = vmul.f32 %v1871_v60, %v3183_v59  ;;  %v1929_v50 = vld [vmem:[#allocation2 + $0x50] sm:$0xff] }
 0x278   :  { %2738 = vpow2.f32 %v1386_v35  ;;  %v1378_v61 = vmul.f32 1.442695, %v1303_v37  ;;  %v3489_v47 = vadd.f32 %v1149_v0, %v3262_v20  ;;  %v1376_v1 = vmul.f32 1.442695, %v1302_v44 }
 0x279   :  { %v3486_v4 = vmax.f32 %v1247_v41, %v1248_v31  ;;  %2740 = vpow2.f32 %v1382_v7  ;;  %v1895_v26 = vadd.f32 %v1891_v22, %v1875_v6  ;;  %v1374_v17 = vmul.f32 1.442695, %v1301_v3 }
 0x27a   :  { %v1902_v39 = vpop.permute.xlu0 %1901  ;;  %2742 = vpow2.f32 %v1380_v12  ;;  %v1372_v41 = vmul.f32 1.442695, %v1300_v24  ;;  %v1273_v0 = vmax.f32 %v1272_v36, %v3482_v63  ;;  %v3504_v24 = vadd.f32 %v2548_v43, %v3273_v25  ;;  %v1950_v36 = vld [vmem:[#allocation2 + $0x70] sm:$0xff] }
 0x27b   :  { %v1912_v35 = vmul.f32 %v1908_v42, %v1902_v39  ;;  %v1322_v57 = vsub.f32 %v3441_v58, %v3486_v4  ;;  %v1323_v60 = vsub.f32 %v3446_v13, %v3486_v4  ;;  %v1321_v37 = vsub.f32 %v3436_v30, %v3486_v4 }
 0x27c   :  { %v2551_v34 = vpop.f32.mrf.mxu0  ;;  %2744 = vpow2.f32 %v1378_v61  ;;  %v1320_v12 = vsub.f32 %v3430_v62, %v3486_v4  ;;  %v1299_v58 = vsub.f32 %v3306_v53, %v3452_v29  ;;  %v1274_v13 = vmax.f32 %v1273_v0, %v3489_v47 }
 0x27d   :  { %v1916_v7 = vadd.f32 %v1912_v35, %v1895_v26  ;;  %v1416_v22 = vmul.f32 1.442695, %v1322_v57  ;;  %v1418_v31 = vmul.f32 1.442695, %v1323_v60  ;;  %2746 = vpow2.f32 %v1376_v1 }
 0x27e   :  { %v1923_v44 = vpop.permute.xlu0 %1922  ;;  %v1159_v42 = vpop.f32.mrf.mxu0  ;;  %2748 = vpow2.f32 %v1374_v17  ;;  %v1414_v30 = vmul.f32 1.442695, %v1321_v37  ;;  %v1319_v62 = vsub.f32 %v3427_v52, %v3486_v4  ;;  %v1298_v6 = vsub.f32 %v3295_v45, %v3452_v29 }
 0x27f   :  { %v1933_v3 = vmul.f32 %v1929_v50, %v1923_v44  ;;  %2750 = vpow2.f32 %v1372_v41  ;;  %v1412_v53 = vmul.f32 1.442695, %v1320_v12  ;;  %v1318_v39 = vsub.f32 %v3403_v10, %v3486_v4  ;;  %v1971_v50 = vld [vmem:[#allocation2 + $0xb0] sm:$0xff] }
 0x280   :  { %2752 = vpow2.f32 %v1418_v31  ;;  %v3513_v1 = vadd.f32 %v1159_v42, %v3288_v40  ;;  %v1370_v43 = vmul.f32 1.442695, %v1299_v58  ;;  %v1297_v26 = vsub.f32 %v3278_v27, %v3452_v29 }
 0x281   :  { %v1937_v61 = vadd.f32 %v1933_v3, %v1916_v7  ;;  %2754 = vpow2.f32 %v1416_v22  ;;  %v1275_v52 = vmax.f32 %v1274_v13, %v3504_v24  ;;  %v1410_v45 = vmul.f32 1.442695, %v1319_v62  ;;  %v1992_v3 = vld [vmem:[#allocation2 + $0xd0] sm:$0xff] }
 0x282   :  { %v1944_v25 = vpop.permute.xlu0 %1943  ;;  %2756 = vpow2.f32 %v1414_v30  ;;  %v1368_v10 = vmul.f32 1.442695, %v1298_v6  ;;  %v1317_v40 = vsub.f32 %v3400_v2, %v3486_v4  ;;  %v1296_v60 = vsub.f32 %v3268_v23, %v3452_v29 }
 0x283   :  { %v1954_v35 = vmul.f32 %v1950_v36, %v1944_v25  ;;  %v1316_v27 = vsub.f32 %v3382_v32, %v3486_v4  ;;  %2758 = vpow2.f32 %v1412_v53  ;;  %v1408_v0 = vmul.f32 1.442695, %v1318_v39 }
 0x284   :  { %v3518_v17 = vpop.eup %2736  ;;  %v3520_v57 = vpop.f32.mrf.mxu0  ;;  %v1276_v7 = vmax.f32 %v1275_v52, %v3513_v1  ;;  %2760 = vpow2.f32 %v1370_v43  ;;  %v1366_v22 = vmul.f32 1.442695, %v1297_v26  ;;  %v1295_v2 = vsub.f32 %v3252_v16, %v3452_v29 }
 0x285   :  { %v3528_v37 = vpop.eup %2738  ;;  %v1958_v41 = vadd.f32 %v1954_v35, %v1937_v61  ;;  %v3537_v23 = vadd.f32 %v2551_v34, %v3303_v48  ;;  %v3996_v58 = vmov 0.0   ;;  %2762 = vpow2.f32 %v1410_v45 }
 0x286   :  { %2565 = vmatpush3.msra.mxu1 %v3528_v37  ;;  %v1965_v12 = vpop.permute.xlu0 %1964  ;;  %v3534_v44 = vpop.eup %2740  ;;  %v1406_v13 = vmul.f32 1.442695, %v1317_v40  ;;  %2764 = vpow2.f32 %v1368_v10  ;;  %v1364_v30 = vmul.f32 1.442695, %v1296_v60  ;;  %v1404_v36 = vmul.f32 1.442695, %v1316_v27 }
 0x287   :  { %v1169_v32 = vpop.f32.mrf.mxu0  ;;  %v1975_v31 = vmul.f32 %v1971_v50, %v1965_v12  ;;  %2566 = vmatprep.subr.mxu1 %v3996_v58  ;;  %v3540_v42 = vpop.eup %2742  ;;  %v1315_v16 = vsub.f32 %v3374_v28, %v3486_v4  ;;  %2766 = vpow2.f32 %v1408_v0  ;;  %v1294_v48 = vsub.f32 %v3242_v14, %v3452_v29 }
 0x288   :  { %2567 = vmatpush3.msra.mxu1 %v3518_v17  ;;  %v1293_v34 = vsub.f32 %v3227_v8, %v3452_v29  ;;  %v3553_v61 = vadd.f32 %v1169_v32, %v3322_v5  ;;  %v1277_v53 = vmax.f32 %v1276_v7, %v3537_v23  ;;  %2768 = vpow2.f32 %v1366_v22  ;;  %v1969_v22 = vld [vmem:[#allocation2 + $0xa0] sm:$0xff] }
 0x289   :  { %v1979_v62 = vadd.f32 %v1975_v31, %v1958_v41  ;;  %2568 = vmatprep.subr.mxu1 %v3996_v58  ;;  %v3550_v6 = vpop.eup %2744  ;;  %v1362_v39 = vmul.f32 1.442695, %v1295_v2  ;;  %2770 = vpow2.f32 %v1406_v13  ;;  %v1402_v14 = vmul.f32 1.442695, %v1315_v16 }
 0x28a   :  { %2569 = vmatpush3.msra.mxu1 %v3534_v44  ;;  %v1986_v28 = vpop.permute.xlu0 %1985  ;;  %v3557_v25 = vpop.eup %2746  ;;  %v1314_v8 = vsub.f32 %v3349_v51, %v3486_v4  ;;  %2772 = vpow2.f32 %v1364_v30  ;;  %v1358_v35 = vmul.f32 1.442695, %v1293_v34  ;;  %v1313_v45 = vsub.f32 %v3346_v49, %v3486_v4 }
 0x28b   :  { %v1996_v43 = vmul.f32 %v1992_v3, %v1986_v28  ;;  %2570 = vmatprep.subr.mxu1 %v3996_v58  ;;  %v3562_v26 = vpop.eup %2748  ;;  %v1292_v50 = vsub.f32 %v3230_v9, %v3452_v29  ;;  %2774 = vpow2.f32 %v1404_v36  ;;  %v1360_v51 = vmul.f32 1.442695, %v1294_v48  ;;  %v3998_v28 = vld [vmem:[#allocation18_spill] sm:$0xff] }
 0x28c   :  { %2571 = vmatpush3.msra.mxu1 %v3540_v42  ;;  %v3565_v52 = vpop.f32.mrf.mxu0  ;;  %v3571_v10 = vpop.eup %2750  ;;  %v1312_v60 = vsub.f32 %v3331_v19, %v3486_v4  ;;  %2776 = vpow2.f32 %v1362_v39  ;;  %v3587_v0 = vadd.f32 %v3520_v57, %v3336_v21  ;;  %v1278_v7 = vmax.f32 %v1277_v53, %v3553_v61 }
 0x28d   :  { %v3573_v40 = vadd.f32 %v1996_v43, %v1979_v62  ;;  %2572 = vmatprep.subr.mxu1 %v3996_v58  ;;  %v3578_v27 = vpop.eup %2752  ;;  %v1356_v9 = vmul.f32 1.442695, %v1292_v50  ;;  %2778 = vpow2.f32 %v1402_v14  ;;  %v1400_v19 = vmul.f32 1.442695, %v1314_v8 }
 0x28e   :  { %2573 = vmatpush3.msra.mxu1 %v3550_v6  ;;  %v1179_v41 = vpop.f32.mrf.mxu0  ;;  %v3581_v49 = vpop.permute.xlu0 %2008  ;;  %2600 = vmatpush3.msra.mxu0 %v3578_v27  ;;  %2780 = vpow2.f32 %v1358_v35  ;;  %v1398_v2 = vmul.f32 1.442695, %v1313_v45  ;;  %v1309_v21 = vsub.f32 %v3310_v55, %v3486_v4  ;;  %v1308_v57 = vsub.f32 %v3298_v46, %v3486_v4 }
 0x28f   :  { %3997 = vst [vmem:[#allocation28_spill] sm:$0xff] %v3581_v49  ;;  %v3583_v29 = vpop.eup %2754  ;;  %2574 = vmatprep.subr.mxu1 %v3996_v58  ;;  %2601 = vmatprep.subr.mxu0 %v3996_v58  ;;  %v3601_v32 = vadd.f32 %v1179_v41, %v3354_v54  ;;  %2782 = vpow2.f32 %v1360_v51  ;;  %v1396_v31 = vmul.f32 1.442695, %v1312_v60  ;;  %v1311_v13 = vsub.f32 %v3328_v18, %v3486_v4  ;;  %v4000_v51 = vld [vmem:[#allocation15_spill] sm:$0xff]  ;;  %v4001_v41 = vld [vmem:[#allocation16_spill] sm:$0xff] }
 0x290   :  { %v3592_v12 = vpop.eup %2756  ;;  %2575 = vmatpush3.msra.mxu1 %v3557_v25  ;;  %2602 = vmatpush3.msra.mxu0 %v3583_v29  ;;  %2784 = vpow2.f32 %v1356_v9  ;;  %v1310_v46 = vsub.f32 %v3313_v56, %v3486_v4  ;;  %v1390_v30 = vmul.f32 1.442695, %v1309_v21  ;;  %v1279_v16 = vmax.f32 %v1278_v7, %v3587_v0  ;;  %v1991_v56 = vld [vmem:[#allocation2 + $0xc8] sm:$0xff]  ;;  %v4002_v21 = vld [vmem:[#allocation14_spill] sm:$0xff] }
 0x291   :  { %2576 = vmatprep.subr.mxu1 %v3996_v58  ;;  %v3607_v3 = vpop.eup %2758  ;;  %2603 = vmatprep.subr.mxu0 %v3996_v58  ;;  %2786 = vpow2.f32 %v1400_v19  ;;  %v1388_v18 = vmul.f32 1.442695, %v1308_v57  ;;  %v1394_v43 = vmul.f32 1.442695, %v1311_v13  ;;  %v3638_v60 = vadd.f32 %v3565_v52, %v4000_v51 }
 0x292   :  { %2577 = vmatpush3.msra.mxu1 %v3562_v26  ;;  %v1961_v55 = vpop.permute.xlu0 %1960  ;;  %v3613_v36 = vpop.eup %2760  ;;  %2604 = vmatpush3.msra.mxu0 %v3592_v12  ;;  %2788 = vpow2.f32 %v1398_v2  ;;  %v1280_v53 = vmax.f32 %v1279_v16, %v3601_v32  ;;  %v1392_v45 = vmul.f32 1.442695, %v1310_v46 }
 0x293   :  { %v1973_v62 = vmul.f32 %v1969_v22, %v1961_v55  ;;  %2578 = vmatprep.subr.mxu1 %v3996_v58  ;;  %v3618_v48 = vpop.eup %2762  ;;  %2605 = vmatprep.subr.mxu0 %v3996_v58  ;;  %2790 = vpow2.f32 %v1396_v31  ;;  %v2013_v22 = vld [vmem:[#allocation2 + $0xf0] sm:$0xff] }
 0x294   :  { %2579 = vmatpush3.msra.mxu1 %v3571_v10  ;;  %v2560_v34 = vpop.f32.mrf.mxu0  ;;  %v3622_v4 = vpop.eup %2764  ;;  %2606 = vmatpush3.msra.mxu0 %v3607_v3  ;;  %2792 = vpow2.f32 %v1390_v30  ;;  %v1281_v52 = vmax.f32 %v1280_v53, %v3638_v60 }
 0x295   :  { %v3626_v39 = vadd.f32 %v1973_v62, %v3998_v28  ;;  %2580 = vmatprep.subr.mxu1 %v3996_v58  ;;  %v3630_v14 = vpop.eup %2766  ;;  %2607 = vmatprep.subr.mxu0 %v3996_v58  ;;  %2794 = vpow2.f32 %v1388_v18 }
 0x296   :  { %2581 = vmatpush3.msra.mxu1 %v3613_v36  ;;  %v1189_v8 = vpop.f32.mrf.mxu0  ;;  %v1984_v35 = vpop.permute.xlu0 %1983  ;;  %2608 = vmatpush3.msra.mxu0 %v3618_v48  ;;  %2796 = vpow2.f32 %v1394_v43 }
 0x297   :  { %3999 = vst [vmem:[#allocation18_spill] sm:$0xff] %v3626_v39  ;;  %v3634_v50 = vpop.eup %2768  ;;  %v3642_v9 = vadd.f32 %v1189_v8, %v4001_v41  ;;  %v1995_v7 = vmul.f32 %v1991_v56, %v1984_v35  ;;  %2582 = vmatprep.subr.mxu1 %v3996_v58  ;;  %2609 = vmatprep.subr.mxu0 %v3996_v58  ;;  %2798 = vpow2.f32 %v1392_v45  ;;  %v4004_v56 = vld [vmem:[#allocation17_spill] sm:$0xff] }
 0x298   :  { %v3645_v19 = vpop.eup %2770  ;;  %2583 = vmatpush3.msra.mxu1 %v3622_v4  ;;  %2610 = vmatpush3.msra.mxu0 %v3630_v14  ;;  %v3666_v53 = vadd.f32 %v2560_v34, %v4004_v56  ;;  %v4006_v45 = vld [vmem:[#allocation21_spill] sm:$0xff] }
 0x299   :  { %v2773_v2 = vpop.eup %2772  ;;  %v3651_v57 = vadd.f32 %v1995_v7, %v4002_v21  ;;  %2584 = vmatprep.subr.mxu1 %v3996_v58  ;;  %2611 = vmatprep.subr.mxu0 %v3996_v58  ;;  %v1282_v46 = vmax.f32 %v1281_v52, %v3642_v9  ;;  %v4007_v52 = vld [vmem:[#allocation20_spill] sm:$0xff] }
 0x29a   :  { %v3655_v31 = vpop.eup %2774  ;;  %2585 = vmatpush3.msra.mxu1 %v3634_v50  ;;  %v2007_v13 = vpop.permute.xlu0 %2006  ;;  %2612 = vmatpush3.msra.mxu0 %v3645_v19 }
 0x29b   :  { %4003 = vst [vmem:[#allocation15_spill] sm:$0xff] %v3651_v57  ;;  %v2777_v55 = vpop.eup %2776  ;;  %v2017_v30 = vmul.f32 %v2013_v22, %v2007_v13  ;;  %2586 = vmatprep.subr.mxu1 %v3996_v58  ;;  %2613 = vmatprep.subr.mxu0 %v3996_v58  ;;  %v1283_v34 = vmax.f32 %v1282_v46, %v3666_v53 }
 0x29c   :  { %v3662_v16 = vpop.eup %2778  ;;  %2587 = vmatpush3.msra.mxu1 %v2773_v2  ;;  %v2563_v62 = vpop.f32.mrf.mxu0  ;;  %2614 = vmatpush3.msra.mxu0 %v3655_v31 }
 0x29d   :  { %v2781_v18 = vpop.eup %2780  ;;  %v3669_v28 = vadd.f32 %v2017_v30, %v3573_v40  ;;  %2588 = vmatprep.subr.mxu1 %v3996_v58  ;;  %2615 = vmatprep.subr.mxu0 %v3996_v58  ;;  %v1205_v21 = vadd.f32 %v2563_v62, %v4007_v52 }
 0x29e   :  { %v2783_v43 = vpop.eup %2782  ;;  %2589 = vmatpush3.msra.mxu1 %v2777_v55  ;;  %v1199_v8 = vpop.f32.mrf.mxu0  ;;  %2616 = vmatpush3.msra.mxu0 %v3662_v16 }
 0x29f   :  { %4005 = vst [vmem:[#allocation16_spill] sm:$0xff] %v3669_v28  ;;  %v2785_v35 = vpop.eup %2784  ;;  %v3676_v51 = vadd.f32 %v1199_v8, %v4006_v45  ;;  %2590 = vmatprep.subr.mxu1 %v3996_v58  ;;  %2617 = vmatprep.subr.mxu0 %v3996_v58 }
 0x2a0   :  { %v2787_v40 = vpop.eup %2786  ;;  %2591 = vmatpush3.msra.mxu1 %v2783_v43  ;;  %v1484_v7 = vadd.f32 %v2785_v35, %v2781_v18 }
 0x2a1   :  { %v2789_v22 = vpop.eup %2788  ;;  %v1284_v13 = vmax.f32 %v1283_v34, %v3676_v51  ;;  %2618 = vmatpush3.msra.mxu0 %v2787_v40  ;;  %2592 = vmatprep.subr.mxu1 %v3996_v58  ;;  %v4008_v34 = vld [vmem:[#allocation9_spill] sm:$0xff] }
 0x2a2   :  { %v2791_v30 = vpop.eup %2790  ;;  %2619 = vmatprep.subr.mxu0 %v3996_v58  ;;  %2593 = vmatpush3.msra.mxu1 %v2781_v18  ;;  %v1485_v46 = vadd.f32 %v2783_v43, %v1484_v7 }
 0x2a3   :  { %v2793_v8 = vpop.eup %2792  ;;  %v1285_v28 = vmax.f32 %v1284_v13, %v1205_v21  ;;  %2620 = vmatpush3.msra.mxu0 %v2789_v22  ;;  %2594 = vmatprep.subr.mxu1 %v3996_v58 }
 0x2a4   :  { %v2795_v49 = vpop.eup %2794  ;;  %2621 = vmatprep.subr.mxu0 %v3996_v58  ;;  %2595 = vmatpush3.msra.mxu1 %v2785_v35  ;;  %v1486_v62 = vadd.f32 %v2777_v55, %v1485_v46  ;;  %v2516_v13 = vpop.f32.mrf.mxu1 }
 0x2a5   :  { %v1286_v57 = vrot.slane %v1285_v28, 4  ;;  %2622 = vmatpush3.msra.mxu0 %v2791_v30  ;;  %2597 = vmatmul.mubr.f32.vlgmr.msra.gmra.mxu1 %v4008_v34  ;;  %v1505_v39 = vadd.f32 %v2795_v49, %v2793_v8  ;;  %v2797_v59 = vpop.eup %2796 }
 0x2a6   :  { %2623 = vmatprep.subr.mxu0 %v3996_v58  ;;  %2634 = vmatprep.subr.mxu1 %v3996_v58  ;;  %v1487_v18 = vadd.f32 %v2773_v2, %v1486_v62  ;;  %v2799_v43 = vpop.eup %2798 }
 0x2a7   :  { %v1287_v7 = vmax.f32 %v1285_v28, %v1286_v57  ;;  %2624 = vmatpush3.msra.mxu0 %v2797_v59  ;;  %2666 = vmatprep.mubr.msk.f32.mxu1 %vm2933_vm2, %v3996_v58  ;;  %v1506_v35 = vadd.f32 %v2799_v43, %v1505_v39  ;;  %v904_v57 = vpop.f32.mrf.mxu1 }
 0x2a8   :  { %2625 = vmatprep.subr.mxu0 %v3996_v58  ;;  %v1488_v55 = vadd.f32 %v3634_v50, %v1487_v18  ;;  %v4009_v50 = vld [vmem:[#allocation8_spill] sm:$0xff] }
 0x2a9   :  { %v1288_v46 = vrot.slane %v1287_v7, 2  ;;  %2626 = vmatpush3.msra.mxu0 %v2799_v43  ;;  %v1507_v52 = vadd.f32 %v2797_v59, %v1506_v35  ;;  %v4010_v43 = vld [vmem:[#allocation13_spill] sm:$0xff] }
 0x2aa   :  { %2627 = vmatprep.subr.mxu0 %v3996_v58  ;;  %v1489_v34 = vadd.f32 %v3622_v4, %v1488_v55  ;;  %v4011_v55 = vld [vmem:[#allocation12_spill] sm:$0xff] }
 0x2ab   :  { %v1289_v2 = vmax.f32 %v1287_v7, %v1288_v46  ;;  %2628 = vmatpush3.msra.mxu0 %v2793_v8  ;;  %v1508_v62 = vadd.f32 %v2791_v30, %v1507_v52 }
 0x2ac   :  { %2629 = vmatprep.subr.mxu0 %v3996_v58  ;;  %v1490_v28 = vadd.f32 %v3613_v36, %v1489_v34  ;;  %v2519_v56 = vpop.f32.mrf.mxu1 }
 0x2ad   :  { %v1290_v45 = vrot.slane %v1289_v2, 1  ;;  %2630 = vmatpush3.msra.mxu0 %v2795_v49  ;;  %v1509_v18 = vadd.f32 %v2789_v22, %v1508_v62 }
 0x2ae   :  { %2632 = vmatmul.mubr.f32.vlgmr.msra.gmra.mxu0 %v4009_v50  ;;  %2669 = vmatprep.subr.mxu0 %v3996_v58  ;;  %v1491_v39 = vadd.f32 %v3571_v10, %v1490_v28  ;;  %v914_v52 = vpop.f32.mrf.mxu1  ;;  %v3712_v10 = vadd.f32 %v904_v57, %v4010_v43  ;;  %v4012_v50 = vld [vmem:[#allocation26_spill] sm:$0xff] }
 0x2af   :  { %v3701_v4 = vmax.f32 %v1289_v2, %v1290_v45  ;;  %2701 = vmatprep.mubr.msk.f32.mxu0 %vm2933_vm2, %v3996_v58  ;;  %v1510_v8 = vadd.f32 %v2787_v40, %v1509_v18  ;;  %v3720_v40 = vadd.f32 %v914_v52, %v3235_v11 }
 0x2b0   :  { %v1492_v59 = vadd.f32 %v3562_v26, %v1491_v39  ;;  %v3717_v26 = vadd.f32 %v2516_v13, %v4011_v55 }
 0x2b1   :  { %v1354_v36 = vsub.f32 %v3676_v51, %v3701_v4  ;;  %v1355_v49 = vsub.f32 %v1205_v21, %v3701_v4  ;;  %v1353_v30 = vsub.f32 %v3666_v53, %v3701_v4  ;;  %v1352_v7 = vsub.f32 %v3642_v9, %v3701_v4 }
 0x2b2   :  { %v1351_v21 = vsub.f32 %v3638_v60, %v3701_v4  ;;  %v1250_v53 = vmax.f32 %v3712_v10, %v3717_v26  ;;  %v1350_v9 = vsub.f32 %v3601_v32, %v3701_v4  ;;  %v1349_v11 = vsub.f32 %v3587_v0, %v3701_v4 }
 0x2b3   :  { %v1482_v45 = vmul.f32 1.442695, %v1355_v49  ;;  %v1480_v22 = vmul.f32 1.442695, %v1354_v36  ;;  %v1478_v51 = vmul.f32 1.442695, %v1353_v30  ;;  %v1348_v2 = vsub.f32 %v3553_v61, %v3701_v4 }
 0x2b4   :  { %v2522_v35 = vpop.f32.mrf.mxu1  ;;  %v1476_v46 = vmul.f32 1.442695, %v1352_v7  ;;  %v1251_v13 = vmax.f32 %v1250_v53, %v3720_v40  ;;  %v1474_v34 = vmul.f32 1.442695, %v1351_v21  ;;  %v3734_v60 = vadd.f32 %v2519_v56, %v3247_v15 }
 0x2b5   :  { %2800 = vpow2.f32 %v1482_v45  ;;  %v1341_v57 = vsub.f32 %v3462_v33, %v3701_v4  ;;  %v1493_v28 = vadd.f32 %v3557_v25, %v1492_v59  ;;  %v1472_v32 = vmul.f32 1.442695, %v1350_v9 }
 0x2b6   :  { %2802 = vpow2.f32 %v1480_v22  ;;  %v924_v62 = vpop.f32.mrf.mxu1  ;;  %v1340_v39 = vsub.f32 %v4012_v50, %v3701_v4  ;;  %v1511_v0 = vadd.f32 %v3662_v16, %v1510_v8  ;;  %v1252_v18 = vmax.f32 %v1251_v13, %v3734_v60 }
 0x2b7   :  { %2804 = vpow2.f32 %v1478_v51  ;;  %v1470_v36 = vmul.f32 1.442695, %v1349_v11  ;;  %v1347_v15 = vsub.f32 %v3537_v23, %v3701_v4  ;;  %v1494_v61 = vadd.f32 %v3550_v6, %v1493_v28  ;;  %v2873_v51 = vld [vmem:[%s3953_s4 + $0x30] sm:$0xff] }
 0x2b8   :  { %2806 = vpow2.f32 %v1476_v46  ;;  %v1468_v33 = vmul.f32 1.442695, %v1348_v2  ;;  %v1342_v25 = vsub.f32 %v3469_v38, %v3701_v4  ;;  %v1512_v59 = vadd.f32 %v3655_v31, %v1511_v0 }
 0x2b9   :  { %2808 = vpow2.f32 %v1474_v34  ;;  %v3750_v49 = vadd.f32 %v924_v62, %v3262_v20  ;;  %v1346_v16 = vsub.f32 %v3513_v1, %v3701_v4  ;;  %v1454_v8 = vmul.f32 1.442695, %v1341_v57  ;;  %v2874_v57 = vld [vmem:[%s3953_s4 + $0x38] sm:$0xff] }
 0x2ba   :  { %v1495_v52 = vadd.f32 %v3540_v42, %v1494_v61  ;;  %2810 = vpow2.f32 %v1472_v32  ;;  %v1343_v23 = vsub.f32 %v3482_v63, %v3701_v4  ;;  %v1452_v6 = vmul.f32 1.442695, %v1340_v39 }
 0x2bb   :  { %v1513_v30 = vadd.f32 %v3645_v19, %v1512_v59  ;;  %2812 = vpow2.f32 %v1470_v36  ;;  %v1466_v38 = vmul.f32 1.442695, %v1347_v15  ;;  %v1345_v31 = vsub.f32 %v3504_v24, %v3701_v4  ;;  %v2872_v24 = vld [vmem:[%s3953_s4 + $0x28] sm:$0xff] }
 0x2bc   :  { %v2525_v56 = vpop.f32.mrf.mxu1  ;;  %v1496_v20 = vadd.f32 %v3534_v44, %v1495_v52  ;;  %2814 = vpow2.f32 %v1468_v33  ;;  %v1344_v1 = vsub.f32 %v3489_v47, %v3701_v4  ;;  %v1456_v42 = vmul.f32 1.442695, %v1342_v25 }
 0x2bd   :  { %v1514_v45 = vadd.f32 %v3630_v14, %v1513_v30  ;;  %v1253_v63 = vmax.f32 %v1252_v18, %v3750_v49  ;;  %v1464_v19 = vmul.f32 1.442695, %v1346_v16  ;;  %2816 = vpow2.f32 %v1454_v8 }
 0x2be   :  { %v934_v43 = vpop.f32.mrf.mxu1  ;;  %v1497_v7 = vadd.f32 %v3518_v17, %v1496_v20  ;;  %v3771_v44 = vadd.f32 %v2872_v24, %v2522_v35  ;;  %v1458_v4 = vmul.f32 1.442695, %v1343_v23  ;;  %2818 = vpow2.f32 %v1452_v6 }
 0x2bf   :  { %v1515_v14 = vadd.f32 %v3618_v48, %v1514_v45  ;;  %v3780_v17 = vadd.f32 %v2873_v51, %v934_v43  ;;  %2820 = vpow2.f32 %v1466_v38  ;;  %v1462_v21 = vmul.f32 1.442695, %v1345_v31  ;;  %v2876_v43 = vld [vmem:[%s3953_s4 + $0x58] sm:$0xff] }
 0x2c0   :  { %v3784_v53 = vadd.f32 %v3528_v37, %v1497_v7  ;;  %v1460_v35 = vmul.f32 1.442695, %v1344_v1  ;;  %2822 = vpow2.f32 %v1456_v42  ;;  %v1254_v9 = vmax.f32 %v1253_v63, %v3771_v44 }
 0x2c1   :  { %v1516_v48 = vadd.f32 %v3607_v3, %v1515_v14  ;;  %2824 = vpow2.f32 %v1464_v19  ;;  %v3805_v28 = vadd.f32 %v2874_v57, %v2525_v56 }
 0x2c2   :  { %v3764_v22 = vpop.eup %2800  ;;  %2826 = vpow2.f32 %v1458_v4  ;;  %v1255_v34 = vmax.f32 %v1254_v9, %v3780_v17  ;;  %v4013_v4 = vld [vmem:[#allocation17_spill] sm:$0xff] }
 0x2c3   :  { %2670 = vmatpush3.msra.mxu0 %v3764_v22  ;;  %v3775_v55 = vpop.eup %2802  ;;  %v1517_v37 = vadd.f32 %v3592_v12, %v1516_v48  ;;  %2828 = vpow2.f32 %v1462_v21  ;;  %v4014_v21 = vld [vmem:[#allocation21_spill] sm:$0xff] }
 0x2c4   :  { %v2528_v47 = vpop.f32.mrf.mxu1  ;;  %2671 = vmatprep.subr.mxu0 %v3996_v58  ;;  %v3788_v46 = vpop.eup %2804  ;;  %2830 = vpow2.f32 %v1460_v35  ;;  %v1256_v50 = vmax.f32 %v1255_v34, %v3805_v28 }
 0x2c5   :  { %2672 = vmatpush3.msra.mxu0 %v3775_v55  ;;  %v3794_v11 = vpop.eup %2806  ;;  %v1518_v3 = vadd.f32 %v3583_v29, %v1517_v37 }
 0x2c6   :  { %2673 = vmatprep.subr.mxu0 %v3996_v58  ;;  %v944_v13 = vpop.f32.mrf.mxu1  ;;  %v3800_v2 = vpop.eup %2808 }
 0x2c7   :  { %2674 = vmatpush3.msra.mxu0 %v3788_v46  ;;  %v3808_v12 = vadd.f32 %v944_v13, %v3322_v5  ;;  %v3813_v32 = vadd.f32 %v3578_v27, %v1518_v3  ;;  %v3815_v29 = vpop.eup %2810  ;;  %v2875_v27 = vld [vmem:[%s3953_s4 + $0x48] sm:$0xff]  ;;  %v4015_v13 = vld [vmem:[#allocation20_spill] sm:$0xff] }
 0x2c8   :  { %2675 = vmatprep.subr.mxu0 %v3996_v58  ;;  %v2813_v39 = vpop.eup %2812  ;;  %v3825_v61 = vadd.f32 %v2875_v27, %v2528_v47 }
 0x2c9   :  { %2676 = vmatpush3.msra.mxu0 %v3794_v11  ;;  %v2815_v5 = vpop.eup %2814  ;;  %v1257_v18 = vmax.f32 %v1256_v50, %v3808_v12 }
 0x2ca   :  { %2677 = vmatprep.subr.mxu0 %v3996_v58  ;;  %v2817_v36 = vpop.eup %2816 }
 0x2cb   :  { %2678 = vmatpush3.msra.mxu0 %v3800_v2  ;;  %v2819_v15 = vpop.eup %2818  ;;  %v1258_v16 = vmax.f32 %v1257_v18, %v3825_v61 }
 0x2cc   :  { %v2531_v62 = vpop.f32.mrf.mxu1  ;;  %2679 = vmatprep.subr.mxu0 %v3996_v58  ;;  %v2821_v33 = vpop.eup %2820  ;;  %v1547_v25 = vadd.f32 %v2819_v15, %v2817_v36 }
 0x2cd   :  { %2680 = vmatpush3.msra.mxu0 %v3815_v29  ;;  %v2823_v59 = vpop.eup %2822  ;;  %v960_v1 = vadd.f32 %v2876_v43, %v2531_v62  ;;  %v4016_v62 = vld [vmem:[#allocation10_spill] sm:$0xff] }
 0x2ce   :  { %v954_v0 = vpop.f32.mrf.mxu1  ;;  %2681 = vmatprep.subr.mxu0 %v3996_v58  ;;  %v2825_v8 = vpop.eup %2824  ;;  %v1548_v23 = vadd.f32 %v2823_v59, %v1547_v25 }
 0x2cf   :  { %2682 = vmatpush3.msra.mxu0 %v2813_v39  ;;  %v3828_v56 = vadd.f32 %v954_v0, %v3354_v54  ;;  %v2827_v6 = vpop.eup %2826 }
 0x2d0   :  { %2683 = vmatprep.subr.mxu0 %v3996_v58  ;;  %v2829_v54 = vpop.eup %2828  ;;  %v1549_v31 = vadd.f32 %v2827_v6, %v1548_v23 }
 0x2d1   :  { %2684 = vmatpush3.msra.mxu0 %v2815_v5  ;;  %v1259_v30 = vmax.f32 %v1258_v16, %v3828_v56  ;;  %v2831_v20 = vpop.eup %2830 }
 0x2d2   :  { %2685 = vmatprep.subr.mxu0 %v3996_v58  ;;  %v1550_v45 = vadd.f32 %v2831_v20, %v1549_v31 }
 0x2d3   :  { %2686 = vmatpush3.msra.mxu0 %v2821_v33  ;;  %v1260_v63 = vmax.f32 %v1259_v30, %v960_v1 }
 0x2d4   :  { %v2534_v52 = vpop.f32.mrf.mxu1  ;;  %2687 = vmatprep.subr.mxu0 %v3996_v58  ;;  %v1551_v19 = vadd.f32 %v2829_v54, %v1550_v45 }
 0x2d5   :  { %2688 = vmatpush3.msra.mxu0 %v2825_v8  ;;  %v970_v14 = vadd.f32 %v2534_v52, %v4013_v4 }
 0x2d6   :  { %v964_v38 = vpop.f32.mrf.mxu1  ;;  %2689 = vmatprep.subr.mxu0 %v3996_v58  ;;  %v1552_v47 = vadd.f32 %v2825_v8, %v1551_v19 }
 0x2d7   :  { %v965_v42 = vadd.f32 %v964_v38, %v4001_v41  ;;  %2690 = vmatpush3.msra.mxu0 %v2829_v54 }
 0x2d8   :  { %2691 = vmatprep.subr.mxu0 %v3996_v58  ;;  %v1553_v51 = vadd.f32 %v2821_v33, %v1552_v47 }
 0x2d9   :  { %2692 = vmatpush3.msra.mxu0 %v2831_v20  ;;  %v1261_v7 = vmax.f32 %v1260_v63, %v965_v42 }
 0x2da   :  { %2693 = vmatprep.subr.mxu0 %v3996_v58  ;;  %v1554_v9 = vadd.f32 %v2815_v5, %v1553_v51 }
 0x2db   :  { %2694 = vmatpush3.msra.mxu0 %v2827_v6  ;;  %v1262_v48 = vmax.f32 %v1261_v7, %v970_v14 }
 0x2dc   :  { %v2537_v24 = vpop.f32.mrf.mxu1  ;;  %2695 = vmatprep.subr.mxu0 %v3996_v58  ;;  %v1555_v3 = vadd.f32 %v2813_v39, %v1554_v9 }
 0x2dd   :  { %2696 = vmatpush3.msra.mxu0 %v2823_v59  ;;  %v980_v37 = vadd.f32 %v2537_v24, %v4015_v13 }
 0x2de   :  { %v974_v41 = vpop.f32.mrf.mxu1  ;;  %2697 = vmatprep.subr.mxu0 %v3996_v58  ;;  %v1556_v50 = vadd.f32 %v3815_v29, %v1555_v3 }
 0x2df   :  { %v975_v35 = vadd.f32 %v974_v41, %v4014_v21  ;;  %2698 = vmatpush3.msra.mxu0 %v2817_v36 }
 0x2e0   :  { %2699 = vmatprep.subr.mxu0 %v3996_v58  ;;  %v1557_v18 = vadd.f32 %v3800_v2, %v1556_v50 }
 0x2e1   :  { %v1263_v34 = vmax.f32 %v1262_v48, %v975_v35  ;;  %2700 = vmatpush3.msra.mxu0 %v2819_v15 }
 0x2e2   :  { %2702 = vmatmul.mubr.f32.vlgmr.msra.gmra.mxu0 %v4016_v62  ;;  %v1558_v33 = vadd.f32 %v3794_v11, %v1557_v18 }
 0x2e3   :  { %v1264_v57 = vmax.f32 %v1263_v34, %v980_v37 }
 0x2e4   :  { %v1559_v5 = vadd.f32 %v3788_v46, %v1558_v33 }
 0x2e5   :  { %v1265_v0 = vrot.slane %v1264_v57, 4 }
 0x2e6   :  { %v1560_v59 = vadd.f32 %v3775_v55, %v1559_v5 }
 0x2e7   :  { %v1266_v27 = vmax.f32 %v1264_v57, %v1265_v0 }
 0x2e8   :  { %v3855_v39 = vadd.f32 %v3764_v22, %v1560_v59 }
 0x2e9   :  { %v1267_v36 = vrot.slane %v1266_v27, 2 }
 0x2eb   :  { %v1268_v25 = vmax.f32 %v1266_v27, %v1267_v36 }
 0x2ed   :  { %v1269_v16 = vrot.slane %v1268_v25, 1 }
 0x2ef   :  { %v1270_v15 = vmax.f32 %v1268_v25, %v1269_v16  ;;  %v4017_v16 = vld [vmem:[#allocation11_spill] sm:$0xff] }
 0x2f1   :  { %v1338_v8 = vsub.f32 %v975_v35, %v1270_v15  ;;  %v1339_v52 = vsub.f32 %v980_v37, %v1270_v15  ;;  %v1337_v29 = vsub.f32 %v970_v14, %v1270_v15  ;;  %v1336_v2 = vsub.f32 %v965_v42, %v1270_v15 }
 0x2f2   :  { %v1335_v11 = vsub.f32 %v960_v1, %v1270_v15  ;;  %v1334_v46 = vsub.f32 %v3828_v56, %v1270_v15  ;;  %v1333_v55 = vsub.f32 %v3825_v61, %v1270_v15  ;;  %v1332_v22 = vsub.f32 %v3808_v12, %v1270_v15 }
 0x2f3   :  { %v1450_v23 = vmul.f32 1.442695, %v1339_v52  ;;  %v1448_v6 = vmul.f32 1.442695, %v1338_v8  ;;  %v1446_v30 = vmul.f32 1.442695, %v1337_v29  ;;  %v1325_v31 = vsub.f32 %v3717_v26, %v1270_v15 }
 0x2f4   :  { %v1444_v54 = vmul.f32 1.442695, %v1336_v2  ;;  %v1442_v38 = vmul.f32 1.442695, %v1335_v11  ;;  %v1440_v20 = vmul.f32 1.442695, %v1334_v46  ;;  %v1324_v43 = vsub.f32 %v3712_v10, %v1270_v15 }
 0x2f5   :  { %2832 = vpow2.f32 %v1450_v23  ;;  %v1438_v42 = vmul.f32 1.442695, %v1333_v55  ;;  %v1331_v45 = vsub.f32 %v3805_v28, %v1270_v15  ;;  %v1436_v1 = vmul.f32 1.442695, %v1332_v22 }
 0x2f6   :  { %2834 = vpow2.f32 %v1448_v6  ;;  %v1326_v63 = vsub.f32 %v3720_v40, %v1270_v15  ;;  %v1330_v56 = vsub.f32 %v3780_v17, %v1270_v15  ;;  %v1422_v61 = vmul.f32 1.442695, %v1325_v31 }
 0x2f7   :  { %2836 = vpow2.f32 %v1446_v30  ;;  %v1327_v19 = vsub.f32 %v3734_v60, %v1270_v15  ;;  %v1420_v12 = vmul.f32 1.442695, %v1324_v43  ;;  %v1434_v26 = vmul.f32 1.442695, %v1331_v45  ;;  %v3898_v43 = vpop.permute.xlu0 %2029 }
 0x2f8   :  { %2838 = vpow2.f32 %v1444_v54  ;;  %v1329_v7 = vsub.f32 %v3771_v44, %v1270_v15  ;;  %v1328_v10 = vsub.f32 %v3750_v49, %v1270_v15  ;;  %v1424_v24 = vmul.f32 1.442695, %v1326_v63 }
 0x2f9   :  { %2840 = vpow2.f32 %v1442_v38  ;;  %v1432_v47 = vmul.f32 1.442695, %v1330_v56  ;;  %v1426_v40 = vmul.f32 1.442695, %v1327_v19  ;;  %v1499_v2 = vrot.slane %v3784_v53, 4  ;;  %v2003_v56 = vpop.permute.xlu1 %2002 }
 0x2fa   :  { %2842 = vpow2.f32 %v1440_v20  ;;  %v1430_v60 = vmul.f32 1.442695, %v1329_v7  ;;  %v1428_v44 = vmul.f32 1.442695, %v1328_v10 }
 0x2fb   :  { %2844 = vpow2.f32 %v1438_v42  ;;  %v1500_v30 = vadd.f32 %v1499_v2, %v3784_v53  ;;  %v1982_v45 = vpop.permute.xlu0 %1981  ;;  %v1909_v2 = vld [vmem:[#allocation2 + $0x38] sm:$0xff] }
 0x2fc   :  { %2846 = vpow2.f32 %v1436_v1  ;;  %v1990_v1 = vld [vmem:[#allocation2 + $0xc0] sm:$0xff] }
 0x2fd   :  { %2848 = vpow2.f32 %v1422_v61  ;;  %v1501_v11 = vrot.slane %v1500_v30, 2  ;;  %v1994_v53 = vmul.f32 %v1990_v1, %v1982_v45  ;;  %v4023_v1 = vld [vmem:[#allocation24_spill] sm:$0xff] }
 0x2fe   :  { %2850 = vpow2.f32 %v1420_v12  ;;  %v2011_v12 = vld [vmem:[#allocation2 + $0xe0] sm:$0xff] }
 0x2ff   :  { %2852 = vpow2.f32 %v1434_v26  ;;  %v1502_v54 = vadd.f32 %v1501_v11, %v1500_v30  ;;  %v2005_v61 = vpop.permute.xlu0 %2004  ;;  %v4018_v26 = vld [vmem:[#allocation18_spill] sm:$0xff]  ;;  %v2015_v7 = vmul.f32 %v2011_v12, %v2003_v56  ;;  %v4020_v30 = vld [vmem:[#allocation19_spill] sm:$0xff] }
 0x300   :  { %2854 = vpow2.f32 %v1424_v24  ;;  %v2032_v24 = vld [vmem:[#allocation2 + $0x100] sm:$0xff] }
 0x301   :  { %2856 = vpow2.f32 %v1432_v47  ;;  %v1503_v55 = vrot.slane %v1502_v54, 1 }
 0x302   :  { %v3868_v28 = vpop.eup %2832  ;;  %2858 = vpow2.f32 %v1426_v40 }
 0x303   :  { %2635 = vmatpush3.msra.mxu1 %v3868_v28  ;;  %v3871_v17 = vpop.eup %2834  ;;  %2860 = vpow2.f32 %v1430_v60  ;;  %v1504_v22 = vadd.f32 %v1503_v55, %v1502_v54 }
 0x304   :  { %2636 = vmatprep.subr.mxu1 %v3996_v58  ;;  %v2837_v49 = vpop.eup %2836  ;;  %2862 = vpow2.f32 %v1428_v44 }
 0x305   :  { %2637 = vmatpush3.msra.mxu1 %v3871_v17  ;;  %v2839_v4 = vpop.eup %2838  ;;  %2864 = vrcp.f32 %v1504_v22 }
 0x306   :  { %2638 = vmatprep.subr.mxu1 %v3996_v58  ;;  %v2841_v14 = vpop.eup %2840 }
 0x307   :  { %2639 = vmatpush3.msra.mxu1 %v2837_v49  ;;  %v2843_v41 = vpop.eup %2842 }
 0x308   :  { %2640 = vmatprep.subr.mxu1 %v3996_v58  ;;  %v2845_v51 = vpop.eup %2844 }
 0x309   :  { %2641 = vmatpush3.msra.mxu1 %v2839_v4  ;;  %v2847_v21 = vpop.eup %2846 }
 0x30a   :  { %2642 = vmatprep.subr.mxu1 %v3996_v58  ;;  %v2849_v35 = vpop.eup %2848 }
 0x30b   :  { %2643 = vmatpush3.msra.mxu1 %v2841_v14  ;;  %v2851_v48 = vpop.eup %2850 }
 0x30c   :  { %2644 = vmatprep.subr.mxu1 %v3996_v58  ;;  %v2853_v9 = vpop.eup %2852  ;;  %v1526_v13 = vadd.f32 %v2851_v48, %v2849_v35 }
 0x30d   :  { %2645 = vmatpush3.msra.mxu1 %v2843_v41  ;;  %v2855_v37 = vpop.eup %2854 }
 0x30e   :  { %2646 = vmatprep.subr.mxu1 %v3996_v58  ;;  %v2857_v34 = vpop.eup %2856  ;;  %v1527_v3 = vadd.f32 %v2855_v37, %v1526_v13 }
 0x30f   :  { %2647 = vmatpush3.msra.mxu1 %v2845_v51  ;;  %v2859_v57 = vpop.eup %2858 }
 0x310   :  { %2648 = vmatprep.subr.mxu1 %v3996_v58  ;;  %v2861_v50 = vpop.eup %2860  ;;  %v1528_v0 = vadd.f32 %v2859_v57, %v1527_v3  ;;  %v4019_v3 = vld [vmem:[#allocation15_spill] sm:$0xff] }
 0x311   :  { %2649 = vmatpush3.msra.mxu1 %v2847_v21  ;;  %v2863_v18 = vpop.eup %2862 }
 0x312   :  { %2650 = vmatprep.subr.mxu1 %v3996_v58  ;;  %v1529_v27 = vadd.f32 %v2863_v18, %v1528_v0  ;;  %v2865_v63 = vpop.eup %2864  ;;  %v2048_v0 = vld [vmem:[%s3954_s5] sm:$0xff] }
 0x313   :  { %2651 = vmatpush3.msra.mxu1 %v2853_v9  ;;  %v1572_v19 = vmul.f32 %v2865_v63, %v1504_v22 }
 0x314   :  { %2652 = vmatprep.subr.mxu1 %v3996_v58  ;;  %v1530_v33 = vadd.f32 %v2861_v50, %v1529_v27 }
 0x315   :  { %2653 = vmatpush3.msra.mxu1 %v2857_v34  ;;  %v1576_v10 = vsub.f32 2.0, %v1572_v19 }
 0x316   :  { %2654 = vmatprep.subr.mxu1 %v3996_v58  ;;  %v1531_v36 = vadd.f32 %v2857_v34, %v1530_v33 }
 0x317   :  { %2655 = vmatpush3.msra.mxu1 %v2861_v50  ;;  %v1580_v44 = vmul.f32 %v2865_v63, %v1576_v10  ;;  %v2035_v10 = vld [vmem:[#allocation2 + $0x118] sm:$0xff] }
 0x318   :  { %2656 = vmatprep.subr.mxu1 %v3996_v58  ;;  %v1532_v5 = vadd.f32 %v2853_v9, %v1531_v36 }
 0x319   :  { %2657 = vmatpush3.msra.mxu1 %v2863_v18 }
 0x31a   :  { %2658 = vmatprep.subr.mxu1 %v3996_v58  ;;  %v1533_v25 = vadd.f32 %v2847_v21, %v1532_v5 }
 0x31b   :  { %2659 = vmatpush3.msra.mxu1 %v2859_v57 }
 0x31c   :  { %2660 = vmatprep.subr.mxu1 %v3996_v58  ;;  %v1534_v59 = vadd.f32 %v2845_v51, %v1533_v25  ;;  %v1562_v25 = vrot.slane %v3855_v39, 4 }
 0x31d   :  { %2661 = vmatpush3.msra.mxu1 %v2855_v37 }
 0x31e   :  { %2662 = vmatprep.subr.mxu1 %v3996_v58  ;;  %v1535_v15 = vadd.f32 %v2843_v41, %v1534_v59  ;;  %v1563_v59 = vadd.f32 %v1562_v25, %v3855_v39  ;;  %v4027_v25 = vld [vmem:[#allocation16_spill] sm:$0xff] }
 0x31f   :  { %2663 = vmatpush3.msra.mxu1 %v2849_v35  ;;  %v2033_v35 = vld [vmem:[#allocation2 + $0x108] sm:$0xff] }
 0x320   :  { %2664 = vmatprep.subr.mxu1 %v3996_v58  ;;  %v1536_v8 = vadd.f32 %v2841_v14, %v1535_v15  ;;  %v1520_v58 = vrot.slane %v3813_v32, 4  ;;  %v2012_v14 = vld [vmem:[#allocation2 + $0xe8] sm:$0xff] }
 0x321   :  { %2665 = vmatpush3.msra.mxu1 %v2851_v48  ;;  %v2016_v13 = vmul.f32 %v2012_v14, %v2005_v61  ;;  %v4024_v61 = vld [vmem:[#allocation25_spill] sm:$0xff] }
 0x322   :  { %2667 = vmatmul.mubr.f32.vlgmr.msra.gmra.mxu1 %v4017_v16  ;;  %v1537_v52 = vadd.f32 %v2839_v4, %v1536_v8  ;;  %v1521_v46 = vadd.f32 %v1520_v58, %v3813_v32  ;;  %v1998_v32 = vadd.f32 %v1994_v53, %v4018_v26  ;;  %v1564_v16 = vrot.slane %v1563_v59, 2  ;;  %v1930_v58 = vld [vmem:[#allocation2 + $0x58] sm:$0xff] }
 0x323   :  { %v2020_v57 = vadd.f32 %v2016_v13, %v4019_v3  ;;  %2712 = vmatprep.mubr.msk.f32.mxu1 %vm129_vm0, %v2048_v0  ;;  %v1993_v53 = vld [vmem:[#allocation2 + $0xd8] sm:$0xff]  ;;  %v2034_v0 = vld [vmem:[#allocation2 + $0x110] sm:$0xff] }
 0x324   :  { %v1538_v29 = vadd.f32 %v2837_v49, %v1537_v52  ;;  %v1522_v38 = vrot.slane %v1521_v46, 2  ;;  %v2019_v40 = vadd.f32 %v2015_v7, %v1998_v32  ;;  %v1565_v15 = vadd.f32 %v1564_v16, %v1563_v59  ;;  %v2014_v26 = vld [vmem:[#allocation2 + $0xf8] sm:$0xff] }
 0x325   :  { %v4025_v7 = vld [vmem:[#allocation27_spill] sm:$0xff] }
 0x326   :  { %v1539_v23 = vadd.f32 %v3871_v17, %v1538_v29  ;;  %v1523_v31 = vadd.f32 %v1522_v38, %v1521_v46  ;;  %v3901_v17 = vpop.permute.xlu0 %2027  ;;  %v1566_v8 = vrot.slane %v1565_v15, 1  ;;  %v1888_v29 = vld [vmem:[#allocation2 + $0x18] sm:$0xff]  ;;  %v4021_v46 = vld [vmem:[#allocation22_spill] sm:$0xff] }
 0x327   :  { %v1892_v11 = vmul.f32 %v1888_v29, %v4020_v30  ;;  %v1913_v55 = vmul.f32 %v1909_v2, %v4021_v46  ;;  %v1951_v38 = vld [vmem:[#allocation2 + $0x78] sm:$0xff] }
 0x328   :  { %v3892_v6 = vadd.f32 %v3868_v28, %v1539_v23  ;;  %v1524_v20 = vrot.slane %v1523_v31, 1  ;;  %v2024_v28 = vpop.permute.xlu1 %2023  ;;  %v1567_v52 = vadd.f32 %v1566_v8, %v1565_v15  ;;  %v1872_v23 = vld [vmem:[#allocation2 + $0x98] sm:$0xff]  ;;  %v1955_v63 = vmul.f32 %v1951_v38, %v4023_v1 }
 0x329   :  { %v2036_v60 = vmul.f32 %v2032_v24, %v2024_v28  ;;  %v1876_v54 = vmul.f32 %v1872_v23, %v4016_v62  ;;  %v1997_v62 = vmul.f32 %v1993_v53, %v4025_v7  ;;  %v4026_v28 = vld [vmem:[#allocation28_spill] sm:$0xff] }
 0x32a   :  { %v1525_v42 = vadd.f32 %v1524_v20, %v1523_v31  ;;  %v2026_v48 = vpop.permute.xlu0 %2025  ;;  %v4022_v31 = vld [vmem:[#allocation23_spill] sm:$0xff] }
 0x32b   :  { %v2040_v51 = vadd.f32 %v2036_v60, %v2019_v40  ;;  %v2037_v34 = vmul.f32 %v2033_v35, %v2026_v48  ;;  %v1896_v22 = vadd.f32 %v1892_v11, %v1876_v54  ;;  %v1934_v20 = vmul.f32 %v1930_v58, %v4022_v31 }
 0x32c   :  { %2866 = vrcp.f32 %v1525_v42  ;;  %v1541_v48 = vrot.slane %v3892_v6, 4 }
 0x32d   :  { %v2041_v27 = vadd.f32 %v2037_v34, %v2020_v57  ;;  %2868 = vrcp.f32 %v1567_v52  ;;  %v1917_v45 = vadd.f32 %v1913_v55, %v1896_v22 }
 0x32e   :  { %v1542_v13 = vadd.f32 %v1541_v48, %v3892_v6  ;;  %v2049_v6 = vld [vmem:[%s3954_s5 + $0x8] sm:$0xff]  ;;  %v2059_v29 = vpop.permute.xlu0 %2058 }
 0x32f   :  { %v1938_v56 = vadd.f32 %v1934_v20, %v1917_v45 }
 0x331   :  { %v1959_v32 = vadd.f32 %v1955_v63, %v1938_v56 }
 0x332   :  { %v2069_v46 = vpop.permute.xlu0 %2068 }
 0x339   :  { %v2867_v47 = vpop.eup %2866 }
 0x33a   :  { %v1573_v4 = vmul.f32 %v2867_v47, %v1525_v42  ;;  %v2869_v39 = vpop.eup %2868  ;;  %v1972_v42 = vld [vmem:[#allocation2 + $0xb8] sm:$0xff] }
 0x33b   :  { %v1976_v19 = vmul.f32 %v1972_v42, %v4024_v61  ;;  %v1575_v12 = vmul.f32 %v2869_v39, %v1567_v52  ;;  %v2064_v52 = vpop.permute.xlu1 %2063 }
 0x33c   :  { %v1577_v37 = vsub.f32 2.0, %v1573_v4 }
 0x33d   :  { %v1980_v24 = vadd.f32 %v1976_v19, %v1959_v32  ;;  %v1579_v40 = vsub.f32 2.0, %v1575_v12 }
 0x33e   :  { %v1581_v50 = vmul.f32 %v2867_v47, %v1577_v37  ;;  %v2018_v47 = vmul.f32 %v2014_v26, %v4026_v28  ;;  %v1543_v37 = vrot.slane %v1542_v13, 2 }
 0x33f   :  { %v2001_v60 = vadd.f32 %v1997_v62, %v1980_v24  ;;  %v1583_v4 = vmul.f32 %v2869_v39, %v1579_v40  ;;  %v2074_v58 = vpop.permute.xlu1 %2073 }
 0x340   :  { %v1544_v34 = vadd.f32 %v1543_v37, %v1542_v13 }
 0x342   :  { %v1545_v3 = vrot.slane %v1544_v34, 1 }
 0x344   :  { %v1546_v57 = vadd.f32 %v1545_v3, %v1544_v34 }
 0x346   :  { %2870 = vrcp.f32 %v1546_v57 }
 0x365   :  { %v1650_v49 = vpop.f32.mrf.mxu1 }
 0x366   :  { %v1864_v41 = vmul.f32 %v1650_v49, %v1580_v44  ;;  %v2039_v44 = vmul.f32 %v2035_v10, %v3898_v43  ;;  %v2022_v49 = vadd.f32 %v2018_v47, %v2001_v60 }
 0x367   :  { %v2598_v21 = vpop.f32.mrf.mxu1 }
 0x368   :  { %v3903_v9 = vadd.f32 %v2040_v51, %v1864_v41  ;;  %v2043_v41 = vadd.f32 %v2039_v44, %v2022_v49 }
 0x36e   :  { %v1720_v18 = vpop.f32.mrf.mxu0 }
 0x36f   :  { %v1865_v33 = vmul.f32 %v1720_v18, %v1581_v50  ;;  %v2871_v50 = vpop.eup %2870 }
 0x370   :  { %v2633_v36 = vpop.f32.mrf.mxu0  ;;  %v1574_v43 = vmul.f32 %v2871_v50, %v1546_v57 }
 0x371   :  { %v3910_v5 = vadd.f32 %v2041_v27, %v1865_v33  ;;  %v2038_v27 = vmul.f32 %v2034_v0, %v3901_v17  ;;  %v2050_v17 = vld [vmem:[%s3954_s5 + $0x10] sm:$0xff] }
 0x372   :  { %v1578_v18 = vsub.f32 2.0, %v1574_v43 }
 0x373   :  { %v2042_v59 = vadd.f32 %v2038_v27, %v4027_v25 }
 0x374   :  { %v1582_v33 = vmul.f32 %v2871_v50, %v1578_v18 }
 0x3a2   :  { %v1860_v14 = vpop.f32.mrf.mxu0 }
 0x3a3   :  { %v1867_v51 = vmul.f32 %v1860_v14, %v1583_v4 }
 0x3a4   :  { %v2703_v21 = vpop.f32.mrf.mxu0 }
 0x3a5   :  { %v2047_v35 = vadd.f32 %v2043_v41, %v1867_v51 }
 0x3a7   :  { %2704 = vmatprep.subr.mxu1 %v2047_v35 }
 0x3a8   :  { %2705 = vmatpush3.msra.mxu1 %v2047_v35 }
 0x3e2   :  { %v1790_v36 = vpop.f32.mrf.mxu1 }
 0x3e3   :  { %v1866_v16 = vmul.f32 %v1790_v36, %v1582_v33 }
 0x3e4   :  { %v2668_v15 = vpop.f32.mrf.mxu1 }
 0x3e5   :  { %v2046_v8 = vadd.f32 %v2042_v59, %v1866_v16 }
 0x3e7   :  { %2706 = vmatprep.subr.mxu1 %v2046_v8 }
 0x3e8   :  { %2707 = vmatpush3.msra.mxu1 %v2046_v8 }
 0x3e9   :  { %2708 = vmatprep.subr.mxu1 %v3910_v5 }
 0x3ea   :  { %2709 = vmatpush3.msra.mxu1 %v3910_v5  ;;  %v2051_v5 = vld [vmem:[%s3954_s5 + $0x18] sm:$0xff]  ;;  %s2897_s5 = scalar_lea.vmem %s2183_s30, 512 }
 0x3eb   :  { %2710 = vmatprep.subr.mxu1 %v3903_v9  ;;  %p2898_p5 = scmp.ne.s32.totalorder %s2183_s30, %s2897_s5  ;;  %p2903_p7 = scmp.lt.s32.totalorder %s2897_s5, %s2897_s5 }
 0x3ec   :  { %2711 = vmatpush3.msra.mxu1 %v3903_v9 }
 0x3ed   :  { %2713 = vmatmul.mubr.msk.f32.vlgmr.msra.gmra.mxu1 %vm129_vm0, %v2049_v6  ;;  %p2904_p8 = por %p2903_p7, %p2902_p6 }
 0x3ee   :  { %2715 = vmatprep.mubr.msk.f32.mxu1 %vm129_vm0, %v2050_v17 }
 0x3ef   :  { %p2905_p9 = pnand %p2904_p8, %p2898_p5 }
 0x3f1   :  { %2716 = vmatmul.mubr.msk.f32.gmra.mxu1 %vm129_vm0, %v2051_v5 }
 0x4ad   :  { %v2714_v23 = vpop.f32.mrf.mxu1 }
 0x4ae   :  { %v2160_v2 = vadd.f32 %v2714_v23, %v2064_v52 }
 0x4af   :  { %v2154_v30 = vpop.f32.mrf.mxu1 }
 0x4b0   :  { %2174 = vst [vmem:[#allocation5 + $0x8] sm:$0xff] %v2160_v2  ;;  %v2155_v11 = vadd.f32 %v2154_v30, %v2059_v29 }
 0x4b1   :  { %v2717_v54 = vpop.f32.mrf.mxu1 }
 0x4b2   :  { %2173 = vst [vmem:[#allocation5] sm:$0xff] %v2155_v11  ;;  %v2170_v9 = vadd.f32 %v2717_v54, %v2074_v58 }
 0x4b3   :  { %v2164_v55 = vpop.f32.mrf.mxu1 }
 0x4b4   :  { %2176 = vst [vmem:[#allocation5 + $0x18] sm:$0xff] %v2170_v9  ;;  %v2165_v38 = vadd.f32 %v2164_v55, %v2069_v46 }
 0x4b6   :  { %2175 = vst [vmem:[#allocation5 + $0x10] sm:$0xff] %v2165_v38 }
 0x4b7   :  { %2908 = shalt.err (!%p2905_p9)
}
 0x4b8   :  { %2188 = dma.vmem_to_hbm [thread:$0]  %s2183_s30, 512, %s3956_s7, [#allocation4], %s2922_s27, %s2922_s27, %s2923_s28  }
 0x4b9   :  { %2919 = dma.done.wait [#allocation4], 512  }
 0x4ba   :  { %2920 = vsyncadd [#allocation4], 4294966784 }
 0x4bb   :  { %2192 = vsyncpa [#allocation3], 1 }
 0x4bc   :  { %2193 = vsyncpa [#allocation4], 1 }

</bundles_post_ra>
